<compile_context>
chip_gen: v5e
topology: v5e:2x2
jax: 0.10.0
libtpu: 0.0.40
codegen_flags: <defaults>
</compile_context>

<pallas_src>
import math

import jax
import jax.numpy as jnp
from jax.experimental import pallas as pl
from jax.experimental.pallas import tpu as pltpu


# ---------------------------------------------------------------------------
# Fused whole-respath kernel (built per (num_stages, N*H, W*c_out, eps)).
# ---------------------------------------------------------------------------
def _make_respath_kernel(num_stages, nh, w_co, eps):

    def kernel(*refs):
        x_ref, mask_ref, p_ref = refs[:3]
        stage_refs = refs[3:-1]
        o_ref = refs[-1]

        p_mat = p_ref[...]            # [W*co, W*co] f32: per-channel avg & lane broadcast
        m_up = mask_ref[:, 0:1]       # [NH, 1] f32: 0 at h == 0
        m_dn = mask_ref[:, 1:2]       # [NH, 1] f32: 0 at h == H-1

        def bn_proj(col_sums):
            # [k, W*co] per-lane column sums -> lane-broadcast per-channel means.
            return jnp.dot(col_sums, p_mat, preferred_element_type=jnp.float32)

        def bn_pair(v1, v2, g1, b1, g2, b2):
            # Two INDEPENDENT training-mode BNs share their tiny MXU projections.
            cs = jnp.concatenate([jnp.sum(v1, axis=0, keepdims=True),
                                  jnp.sum(v2, axis=0, keepdims=True)], axis=0)
            mean = bn_proj(cs)                                    # [2, W*co]
            d1 = v1 - mean[0:1, :]
            d2 = v2 - mean[1:2, :]
            ss = jnp.concatenate([jnp.sum(d1 * d1, axis=0, keepdims=True),
                                  jnp.sum(d2 * d2, axis=0, keepdims=True)], axis=0)
            inv = jax.lax.rsqrt(bn_proj(ss) + eps)                # [2, W*co]
            return d1 * (g1 * inv[0:1, :]) + b1, d2 * (g2 * inv[1:2, :]) + b2

        def bn_single(v, g, b):
            mean = bn_proj(jnp.sum(v, axis=0, keepdims=True))     # [1, W*co]
            d = v - mean
            inv = jax.lax.rsqrt(bn_proj(jnp.sum(d * d, axis=0, keepdims=True)) + eps)
            return d * (g * inv) + b

        xb = x_ref[...]                                           # bf16 [NH, W*ci0]
        xf = xb.astype(jnp.float32)
        out = None
        for s in range(num_stages):
            w_ref, bnp_ref = stage_refs[2 * s], stage_refs[2 * s + 1]
            bnp = bnp_ref[...]                                    # [6, W*co] f32
            g_cv, b_cv = bnp[0:1, :], bnp[1:2, :]
            g_bn, b_bn = bnp[2:3, :], bnp[3:4, :]
            g_sc, b_sc = bnp[4:5, :], bnp[5:6, :]

            # h-shifted conv taps: XLU sublane roll + image-boundary zero mask
            # (replaces the old [NH,NH] shift-matrix matmuls).  roll(x,1)[r]=x[r-1].
            x_up = (pltpu.roll(xf, shift=1, axis=0) * m_up).astype(jnp.bfloat16)
            x_dn = (pltpu.roll(xf, shift=nh - 1, axis=0) * m_dn).astype(jnp.bfloat16)

            # One fused MXU op: 3x3 conv (K-concat of 3 row taps) + 1x1 shortcut
            # (extra output columns fed only by the centre tap).
            xcat = jnp.concatenate([x_up, xb, x_dn], axis=1)      # [NH, 3*W*ci]
            z = jnp.dot(xcat, w_ref[...],
                        preferred_element_type=jnp.float32)       # [NH, 2*W*co]
            conv = z[:, :w_co]
            short_pre = z[:, w_co:]

            # convs[s] BN and shortcuts[s] BN are independent -> paired stats.
            y, short = bn_pair(conv, short_pre, g_cv, b_cv, g_sc, b_sc)
            y = jnp.maximum(y, 0.0)                               # convs[s] relu
            y = jnp.maximum(bn_single(y, g_bn, b_bn), 0.0)        # relu(bns[s](x))
            out = jnp.maximum(bn_single(y + short, g_bn, b_bn), 0.0)  # relu(bns[s](x+sc))
            if s + 1 < num_stages:
                xf = out
                xb = out.astype(jnp.bfloat16)

        o_ref[...] = out

    return kernel


# ---------------------------------------------------------------------------
# One-time (per weight update) constant construction -- NOT on the fwd path.
# ---------------------------------------------------------------------------
def _band_matrices(w_conv3, W):
    """w_conv3: [c_out, c_in, 3, 3] (OIHW). Returns [3, W*c_in, W*c_out]:
    slice kh encodes the full (kw, channel) contraction of the 3x3 conv for
    row offset dh = kh-1 as one banded matmul over the W*c_in lane axis.
    The w-boundary zero padding falls out of the band clipping."""
    c_out, c_in = w_conv3.shape[0], w_conv3.shape[1]
    mats = []
    for kh in range(3):
        b = jnp.zeros((W, c_in, W, c_out), jnp.float32)
        for kw in range(3):
            dw = kw - 1
            sel = jnp.eye(W, W, k=-dw, dtype=jnp.float32)  # sel[wi,wo]=1 iff wi==wo+dw
            b = b + jnp.einsum('ab,oc->acbo', sel, w_conv3[:, :, kh, kw])
        mats.append(b.reshape(W * c_in, W * c_out))
    return jnp.stack(mats, axis=0)


def _block_diag_1x1(w_conv1, W):
    """w_conv1: [c_out, c_in, 1, 1] -> block-diagonal [W*c_in, W*c_out]."""
    b = jnp.einsum('ab,oc->acbo', jnp.eye(W, dtype=jnp.float32),
                   w_conv1[:, :, 0, 0])
    return b.reshape(W * w_conv1.shape[1], W * w_conv1.shape[0])


def prepare_rethpath_constants(params, N, H, W):
    """Build all kernel constants once per weight update (hoisted off the
    per-forward path: the fused kernel itself is only microseconds)."""
    c_out = params[0]['wc'].shape[0]
    nh = N * H
    count = N * H * W

    # Boundary masks for the h-shifted conv taps (zero rows at image h edges).
    h_idx = jnp.arange(nh) % H
    mask = jnp.stack([(h_idx != 0), (h_idx != H - 1)],
                     axis=1).astype(jnp.float32)                   # [NH, 2]

    # Per-channel "sum over W lane-groups, average, broadcast back" projection:
    # p[i, j] = 1/count iff lanes i and j hold the same channel.
    ch = jnp.arange(W * c_out) % c_out
    p_mat = (ch[:, None] == ch[None, :]).astype(jnp.float32) / float(count)

    stages = []
    for i, p in enumerate(params):
        wc, ws = p['wc'], p['ws']
        ci = wc.shape[1]
        # Pad stage-0 input channels up to c_out so the lane axis stays a
        # multiple of 128 (W*c_out); zero weight columns are exact no-ops.
        ci_pad = max(ci, c_out) if i == 0 else ci
        if ci_pad != ci:
            wc = jnp.pad(wc, ((0, 0), (0, ci_pad - ci), (0, 0), (0, 0)))
            ws = jnp.pad(ws, ((0, 0), (0, ci_pad - ci), (0, 0), (0, 0)))
        b3 = _band_matrices(wc, W)                                 # [3, W*ci, W*co]
        bs = _block_diag_1x1(ws, W)                                # [W*ci, W*co]
        zero = jnp.zeros_like(bs)
        # Fused matmul weight: K-concat of the 3 conv row taps; the 1x1 shortcut
        # lives in the extra output columns fed only by the centre (dh=0) tap.
        w_full = jnp.concatenate([
            jnp.concatenate([b3[0], zero], axis=1),
            jnp.concatenate([b3[1], bs], axis=1),
            jnp.concatenate([b3[2], zero], axis=1)],
            axis=0).astype(jnp.bfloat16)                           # [3*W*ci, 2*W*co]
        bnp = jnp.stack([jnp.tile(p['bn_cv_g'], W), jnp.tile(p['bn_cv_b'], W),
                         jnp.tile(p['bn_g'], W), jnp.tile(p['bn_b'], W),
                         jnp.tile(p['bn_sc_g'], W), jnp.tile(p['bn_sc_b'], W)],
                        axis=0).astype(jnp.float32)                # [6, W*c_out]
        stages.append((w_full, bnp))

    return dict(mask=mask, p_mat=p_mat, stages=tuple(stages))


# ---------------------------------------------------------------------------
# Rethpath forward (thin per-call wrapper: layout plumbing + one pallas_call).
# ---------------------------------------------------------------------------
def rethpath_forward(x_nchw, consts, *, eps=1e-5):
    N, c_in0, H, W = x_nchw.shape
    stages = consts['stages']
    num_stages = len(stages)
    c_out = consts['p_mat'].shape[0] // W
    nh = N * H
    w_co = W * c_out
    ci0_pad = stages[0][0].shape[0] // (3 * W)

    # NCHW -> NHWC (+channel pad) -> lane-dense [N*H, W*C] slab, fed as bf16.
    x_nhwc = jnp.transpose(x_nchw, (0, 2, 3, 1))
    if ci0_pad != c_in0:
        x_nhwc = jnp.pad(x_nhwc, ((0, 0), (0, 0), (0, 0), (0, ci0_pad - c_in0)))
    x2 = x_nhwc.reshape(nh, W * ci0_pad).astype(jnp.bfloat16)

    inputs = [x2, consts['mask'], consts['p_mat']]
    for w_full, bnp in stages:
        inputs += [w_full, bnp]

    io_bytes = sum(int(a.size) * a.dtype.itemsize for a in inputs) + nh * w_co * 4
    kernel = _make_respath_kernel(num_stages, nh, w_co, eps)
    out2 = pl.pallas_call(
        kernel,
        out_shape=jax.ShapeDtypeStruct((nh, w_co), jnp.float32),
        in_specs=[pl.BlockSpec(memory_space=pltpu.MemorySpace.VMEM)] * len(inputs),
        out_specs=pl.BlockSpec(memory_space=pltpu.MemorySpace.VMEM),
        compiler_params=pltpu.CompilerParams(
            vmem_limit_bytes=max(4 * io_bytes, 4 * 1024 * 1024)),
    )(*inputs)

    # [N*H, W*c_out] -> NHWC -> NCHW
    return jnp.transpose(out2.reshape(N, H, W, c_out), (0, 3, 1, 2))


# ---------------------------------------------------------------------------
# Deterministic parameter init (mirrors the PyTorch module's defaults).
# Conv biases are intentionally omitted: they are exactly cancelled by the
# training-mode BatchNorm that immediately follows each conv.
# ---------------------------------------------------------------------------
def init_rethpath_params(key, num_in, num_out, respath_length):
    params = []
    for i in range(respath_length):
        c_in = num_in if i == 0 else num_out
        key, k3, k1 = jax.random.split(key, 3)
        bound3 = 1.0 / math.sqrt(c_in * 9)    # kaiming_uniform(a=sqrt(5)) bound
        bound1 = 1.0 / math.sqrt(c_in * 1)
        params.append(dict(
            wc=jax.random.uniform(k3, (num_out, c_in, 3, 3), jnp.float32,
                                  -bound3, bound3),
            ws=jax.random.uniform(k1, (num_out, c_in, 1, 1), jnp.float32,
                                  -bound1, bound1),
            bn_cv_g=jnp.ones((num_out,), jnp.float32),
            bn_cv_b=jnp.zeros((num_out,), jnp.float32),
            bn_sc_g=jnp.ones((num_out,), jnp.float32),
            bn_sc_b=jnp.zeros((num_out,), jnp.float32),
            bn_g=jnp.ones((num_out,), jnp.float32),
            bn_b=jnp.zeros((num_out,), jnp.float32),
        ))
    return params


if __name__ == "__main__":
    key = jax.random.PRNGKey(0)
    k_x, k_p = jax.random.split(key)

    N, C_in, H, W = 2, 4, 16, 16
    C_out, respath_length = 8, 2

    x = jax.random.normal(k_x, (N, C_in, H, W), jnp.float32)
    params = init_rethpath_params(k_p, C_in, C_out, respath_length)

    # Constants built once per weight update, off the per-forward path.
    consts = prepare_rethpath_constants(params, N, H, W)
    consts = jax.tree_util.tree_map(jax.block_until_ready, consts)

    fwd = jax.jit(rethpath_forward)
    out = fwd(x, consts)
    jax.block_until_ready(out)

    assert out.shape == (N, C_out, H, W)
    assert bool(jnp.all(jnp.isfinite(out)))
    print("KERNEL_OK")
</pallas_src>

<mosaic_0001>
module attributes {stable_mosaic.version = 11 : i64} {
  func.func @kernel(%arg0: memref<32x128xbf16, #tpu.memory_space<vmem>>, %arg1: memref<32x2xf32, #tpu.memory_space<vmem>>, %arg2: memref<128x128xf32, #tpu.memory_space<vmem>>, %arg3: memref<384x256xbf16, #tpu.memory_space<vmem>>, %arg4: memref<6x128xf32, #tpu.memory_space<vmem>>, %arg5: memref<384x256xbf16, #tpu.memory_space<vmem>>, %arg6: memref<6x128xf32, #tpu.memory_space<vmem>>, %arg7: memref<32x128xf32, #tpu.memory_space<vmem>>) attributes {dimension_semantics = [], scalar_prefetch = 0 : i64, scratch_operands = 0 : i64, tpu.core_type = #tpu.core_type<tc>} {
    %c0 = arith.constant 0 : index
    %c0_0 = arith.constant 0 : index
    %0 = vector.load %arg2[%c0, %c0_0] : memref<128x128xf32, #tpu.memory_space<vmem>>, vector<128x128xf32>
    %c0_1 = arith.constant 0 : index
    %c0_2 = arith.constant 0 : index
    %1 = vector.load %arg1[%c0_1, %c0_2] : memref<32x2xf32, #tpu.memory_space<vmem>>, vector<32x1xf32>
    %c0_3 = arith.constant 0 : index
    %c1 = arith.constant 1 : index
    %2 = vector.load %arg1[%c0_3, %c1] : memref<32x2xf32, #tpu.memory_space<vmem>>, vector<32x1xf32>
    %c0_4 = arith.constant 0 : index
    %c0_5 = arith.constant 0 : index
    %3 = vector.load %arg0[%c0_4, %c0_5] : memref<32x128xbf16, #tpu.memory_space<vmem>>, vector<32x128xbf16>
    %4 = arith.extf %3 : vector<32x128xbf16> to vector<32x128xf32>
    %c0_6 = arith.constant 0 : index
    %c0_7 = arith.constant 0 : index
    %5 = vector.load %arg4[%c0_6, %c0_7] : memref<6x128xf32, #tpu.memory_space<vmem>>, vector<6x128xf32>
    %6 = vector.extract_strided_slice %5 {offsets = [0, 0], sizes = [1, 128], strides = [1, 1]} : vector<6x128xf32> to vector<1x128xf32>
    %7 = vector.extract_strided_slice %5 {offsets = [1, 0], sizes = [1, 128], strides = [1, 1]} : vector<6x128xf32> to vector<1x128xf32>
    %8 = vector.extract_strided_slice %5 {offsets = [2, 0], sizes = [1, 128], strides = [1, 1]} : vector<6x128xf32> to vector<1x128xf32>
    %9 = vector.extract_strided_slice %5 {offsets = [3, 0], sizes = [1, 128], strides = [1, 1]} : vector<6x128xf32> to vector<1x128xf32>
    %10 = vector.extract_strided_slice %5 {offsets = [4, 0], sizes = [1, 128], strides = [1, 1]} : vector<6x128xf32> to vector<1x128xf32>
    %11 = vector.extract_strided_slice %5 {offsets = [5, 0], sizes = [1, 128], strides = [1, 1]} : vector<6x128xf32> to vector<1x128xf32>
    %c1_i32 = arith.constant 1 : i32
    %12 = tpu.dynamic_rotate %4 by %c1_i32 dim 0 : vector<32x128xf32>, i32 -> vector<32x128xf32>
    %13 = vector.broadcast %1 : vector<32x1xf32> to vector<32x128xf32>
    %14 = arith.mulf %12, %13 : vector<32x128xf32>
    %15 = arith.truncf %14 : vector<32x128xf32> to vector<32x128xbf16>
    %c31_i32 = arith.constant 31 : i32
    %16 = tpu.dynamic_rotate %4 by %c31_i32 dim 0 : vector<32x128xf32>, i32 -> vector<32x128xf32>
    %17 = vector.broadcast %2 : vector<32x1xf32> to vector<32x128xf32>
    %18 = arith.mulf %16, %17 : vector<32x128xf32>
    %19 = arith.truncf %18 : vector<32x128xf32> to vector<32x128xbf16>
    %20 = tpu.concatenate %15, %3, %19 in 1 : vector<32x128xbf16>, vector<32x128xbf16>, vector<32x128xbf16> -> vector<32x384xbf16>
    %c0_8 = arith.constant 0 : index
    %c0_9 = arith.constant 0 : index
    %21 = vector.load %arg3[%c0_8, %c0_9] : memref<384x256xbf16, #tpu.memory_space<vmem>>, vector<384x256xbf16>
    %cst = arith.constant dense<0.000000e+00> : vector<32x256xf32>
    %22 = tpu.matmul %20, %21, %cst {dimension_numbers = #tpu.dot_dimension_numbers<[1], [0], [0], [1], [0, 0, 1, 1], [], []>} : vector<32x384xbf16>, vector<384x256xbf16>, vector<32x256xf32> -> vector<32x256xf32>
    %23 = vector.extract_strided_slice %22 {offsets = [0, 0], sizes = [32, 128], strides = [1, 1]} : vector<32x256xf32> to vector<32x128xf32>
    %24 = vector.extract_strided_slice %22 {offsets = [0, 128], sizes = [32, 128], strides = [1, 1]} : vector<32x256xf32> to vector<32x128xf32>
    %cst_10 = arith.constant dense<0.000000e+00> : vector<128xf32>
    %25 = vector.multi_reduction <add>, %23, %cst_10 [0] : vector<32x128xf32> to vector<128xf32>
    %26 = vector.shape_cast %25 : vector<128xf32> to vector<1x128xf32>
    %cst_11 = arith.constant dense<0.000000e+00> : vector<128xf32>
    %27 = vector.multi_reduction <add>, %24, %cst_11 [0] : vector<32x128xf32> to vector<128xf32>
    %28 = vector.shape_cast %27 : vector<128xf32> to vector<1x128xf32>
    %29 = tpu.concatenate %26, %28 in 0 : vector<1x128xf32>, vector<1x128xf32> -> vector<2x128xf32>
    %cst_12 = arith.constant dense<0.000000e+00> : vector<2x128xf32>
    %30 = tpu.matmul %29, %0, %cst_12 {dimension_numbers = #tpu.dot_dimension_numbers<[1], [0], [0], [1], [0, 0, 1, 1], [], []>} : vector<2x128xf32>, vector<128x128xf32>, vector<2x128xf32> -> vector<2x128xf32>
    %31 = vector.extract_strided_slice %30 {offsets = [0, 0], sizes = [1, 128], strides = [1, 1]} : vector<2x128xf32> to vector<1x128xf32>
    %32 = vector.broadcast %31 : vector<1x128xf32> to vector<32x128xf32>
    %33 = arith.subf %23, %32 : vector<32x128xf32>
    %34 = vector.extract_strided_slice %30 {offsets = [1, 0], sizes = [1, 128], strides = [1, 1]} : vector<2x128xf32> to vector<1x128xf32>
    %35 = vector.broadcast %34 : vector<1x128xf32> to vector<32x128xf32>
    %36 = arith.subf %24, %35 : vector<32x128xf32>
    %37 = arith.mulf %33, %33 : vector<32x128xf32>
    %cst_13 = arith.constant dense<0.000000e+00> : vector<128xf32>
    %38 = vector.multi_reduction <add>, %37, %cst_13 [0] : vector<32x128xf32> to vector<128xf32>
    %39 = vector.shape_cast %38 : vector<128xf32> to vector<1x128xf32>
    %40 = arith.mulf %36, %36 : vector<32x128xf32>
    %cst_14 = arith.constant dense<0.000000e+00> : vector<128xf32>
    %41 = vector.multi_reduction <add>, %40, %cst_14 [0] : vector<32x128xf32> to vector<128xf32>
    %42 = vector.shape_cast %41 : vector<128xf32> to vector<1x128xf32>
    %43 = tpu.concatenate %39, %42 in 0 : vector<1x128xf32>, vector<1x128xf32> -> vector<2x128xf32>
    %cst_15 = arith.constant dense<0.000000e+00> : vector<2x128xf32>
    %44 = tpu.matmul %43, %0, %cst_15 {dimension_numbers = #tpu.dot_dimension_numbers<[1], [0], [0], [1], [0, 0, 1, 1], [], []>} : vector<2x128xf32>, vector<128x128xf32>, vector<2x128xf32> -> vector<2x128xf32>
    %cst_16 = arith.constant 9.99999974E-6 : f32
    %45 = vector.broadcast %cst_16 : f32 to vector<2x128xf32>
    %46 = arith.addf %44, %45 : vector<2x128xf32>
    %47 = math.rsqrt %46 : vector<2x128xf32>
    %48 = vector.extract_strided_slice %47 {offsets = [0, 0], sizes = [1, 128], strides = [1, 1]} : vector<2x128xf32> to vector<1x128xf32>
    %49 = arith.mulf %6, %48 : vector<1x128xf32>
    %50 = vector.broadcast %49 : vector<1x128xf32> to vector<32x128xf32>
    %51 = arith.mulf %33, %50 : vector<32x128xf32>
    %52 = vector.broadcast %7 : vector<1x128xf32> to vector<32x128xf32>
    %53 = arith.addf %51, %52 : vector<32x128xf32>
    %54 = vector.extract_strided_slice %47 {offsets = [1, 0], sizes = [1, 128], strides = [1, 1]} : vector<2x128xf32> to vector<1x128xf32>
    %55 = arith.mulf %10, %54 : vector<1x128xf32>
    %56 = vector.broadcast %55 : vector<1x128xf32> to vector<32x128xf32>
    %57 = arith.mulf %36, %56 : vector<32x128xf32>
    %58 = vector.broadcast %11 : vector<1x128xf32> to vector<32x128xf32>
    %59 = arith.addf %57, %58 : vector<32x128xf32>
    %cst_17 = arith.constant 0.000000e+00 : f32
    %60 = vector.broadcast %cst_17 : f32 to vector<32x128xf32>
    %61 = arith.maximumf %53, %60 : vector<32x128xf32>
    %cst_18 = arith.constant dense<0.000000e+00> : vector<128xf32>
    %62 = vector.multi_reduction <add>, %61, %cst_18 [0] : vector<32x128xf32> to vector<128xf32>
    %63 = vector.shape_cast %62 : vector<128xf32> to vector<1x128xf32>
    %cst_19 = arith.constant dense<0.000000e+00> : vector<1x128xf32>
    %64 = tpu.matmul %63, %0, %cst_19 {dimension_numbers = #tpu.dot_dimension_numbers<[1], [0], [0], [1], [0, 0, 1, 1], [], []>} : vector<1x128xf32>, vector<128x128xf32>, vector<1x128xf32> -> vector<1x128xf32>
    %65 = vector.broadcast %64 : vector<1x128xf32> to vector<32x128xf32>
    %66 = arith.subf %61, %65 : vector<32x128xf32>
    %67 = arith.mulf %66, %66 : vector<32x128xf32>
    %cst_20 = arith.constant dense<0.000000e+00> : vector<128xf32>
    %68 = vector.multi_reduction <add>, %67, %cst_20 [0] : vector<32x128xf32> to vector<128xf32>
    %69 = vector.shape_cast %68 : vector<128xf32> to vector<1x128xf32>
    %cst_21 = arith.constant dense<0.000000e+00> : vector<1x128xf32>
    %70 = tpu.matmul %69, %0, %cst_21 {dimension_numbers = #tpu.dot_dimension_numbers<[1], [0], [0], [1], [0, 0, 1, 1], [], []>} : vector<1x128xf32>, vector<128x128xf32>, vector<1x128xf32> -> vector<1x128xf32>
    %cst_22 = arith.constant 9.99999974E-6 : f32
    %71 = vector.broadcast %cst_22 : f32 to vector<1x128xf32>
    %72 = arith.addf %70, %71 : vector<1x128xf32>
    %73 = math.rsqrt %72 : vector<1x128xf32>
    %74 = arith.mulf %8, %73 : vector<1x128xf32>
    %75 = vector.broadcast %74 : vector<1x128xf32> to vector<32x128xf32>
    %76 = arith.mulf %66, %75 : vector<32x128xf32>
    %77 = vector.broadcast %9 : vector<1x128xf32> to vector<32x128xf32>
    %78 = arith.addf %76, %77 : vector<32x128xf32>
    %cst_23 = arith.constant 0.000000e+00 : f32
    %79 = vector.broadcast %cst_23 : f32 to vector<32x128xf32>
    %80 = arith.maximumf %78, %79 : vector<32x128xf32>
    %81 = arith.addf %80, %59 : vector<32x128xf32>
    %cst_24 = arith.constant dense<0.000000e+00> : vector<128xf32>
    %82 = vector.multi_reduction <add>, %81, %cst_24 [0] : vector<32x128xf32> to vector<128xf32>
    %83 = vector.shape_cast %82 : vector<128xf32> to vector<1x128xf32>
    %cst_25 = arith.constant dense<0.000000e+00> : vector<1x128xf32>
    %84 = tpu.matmul %83, %0, %cst_25 {dimension_numbers = #tpu.dot_dimension_numbers<[1], [0], [0], [1], [0, 0, 1, 1], [], []>} : vector<1x128xf32>, vector<128x128xf32>, vector<1x128xf32> -> vector<1x128xf32>
    %85 = vector.broadcast %84 : vector<1x128xf32> to vector<32x128xf32>
    %86 = arith.subf %81, %85 : vector<32x128xf32>
    %87 = arith.mulf %86, %86 : vector<32x128xf32>
    %cst_26 = arith.constant dense<0.000000e+00> : vector<128xf32>
    %88 = vector.multi_reduction <add>, %87, %cst_26 [0] : vector<32x128xf32> to vector<128xf32>
    %89 = vector.shape_cast %88 : vector<128xf32> to vector<1x128xf32>
    %cst_27 = arith.constant dense<0.000000e+00> : vector<1x128xf32>
    %90 = tpu.matmul %89, %0, %cst_27 {dimension_numbers = #tpu.dot_dimension_numbers<[1], [0], [0], [1], [0, 0, 1, 1], [], []>} : vector<1x128xf32>, vector<128x128xf32>, vector<1x128xf32> -> vector<1x128xf32>
    %cst_28 = arith.constant 9.99999974E-6 : f32
    %91 = vector.broadcast %cst_28 : f32 to vector<1x128xf32>
    %92 = arith.addf %90, %91 : vector<1x128xf32>
    %93 = math.rsqrt %92 : vector<1x128xf32>
    %94 = arith.mulf %8, %93 : vector<1x128xf32>
    %95 = vector.broadcast %94 : vector<1x128xf32> to vector<32x128xf32>
    %96 = arith.mulf %86, %95 : vector<32x128xf32>
    %97 = vector.broadcast %9 : vector<1x128xf32> to vector<32x128xf32>
    %98 = arith.addf %96, %97 : vector<32x128xf32>
    %cst_29 = arith.constant 0.000000e+00 : f32
    %99 = vector.broadcast %cst_29 : f32 to vector<32x128xf32>
    %100 = arith.maximumf %98, %99 : vector<32x128xf32>
    %101 = arith.truncf %100 : vector<32x128xf32> to vector<32x128xbf16>
    %c0_30 = arith.constant 0 : index
    %c0_31 = arith.constant 0 : index
    %102 = vector.load %arg6[%c0_30, %c0_31] : memref<6x128xf32, #tpu.memory_space<vmem>>, vector<6x128xf32>
    %103 = vector.extract_strided_slice %102 {offsets = [0, 0], sizes = [1, 128], strides = [1, 1]} : vector<6x128xf32> to vector<1x128xf32>
    %104 = vector.extract_strided_slice %102 {offsets = [1, 0], sizes = [1, 128], strides = [1, 1]} : vector<6x128xf32> to vector<1x128xf32>
    %105 = vector.extract_strided_slice %102 {offsets = [2, 0], sizes = [1, 128], strides = [1, 1]} : vector<6x128xf32> to vector<1x128xf32>
    %106 = vector.extract_strided_slice %102 {offsets = [3, 0], sizes = [1, 128], strides = [1, 1]} : vector<6x128xf32> to vector<1x128xf32>
    %107 = vector.extract_strided_slice %102 {offsets = [4, 0], sizes = [1, 128], strides = [1, 1]} : vector<6x128xf32> to vector<1x128xf32>
    %108 = vector.extract_strided_slice %102 {offsets = [5, 0], sizes = [1, 128], strides = [1, 1]} : vector<6x128xf32> to vector<1x128xf32>
    %c1_i32_32 = arith.constant 1 : i32
    %109 = tpu.dynamic_rotate %100 by %c1_i32_32 dim 0 : vector<32x128xf32>, i32 -> vector<32x128xf32>
    %110 = vector.broadcast %1 : vector<32x1xf32> to vector<32x128xf32>
    %111 = arith.mulf %109, %110 : vector<32x128xf32>
    %112 = arith.truncf %111 : vector<32x128xf32> to vector<32x128xbf16>
    %c31_i32_33 = arith.constant 31 : i32
    %113 = tpu.dynamic_rotate %100 by %c31_i32_33 dim 0 : vector<32x128xf32>, i32 -> vector<32x128xf32>
    %114 = vector.broadcast %2 : vector<32x1xf32> to vector<32x128xf32>
    %115 = arith.mulf %113, %114 : vector<32x128xf32>
    %116 = arith.truncf %115 : vector<32x128xf32> to vector<32x128xbf16>
    %117 = tpu.concatenate %112, %101, %116 in 1 : vector<32x128xbf16>, vector<32x128xbf16>, vector<32x128xbf16> -> vector<32x384xbf16>
    %c0_34 = arith.constant 0 : index
    %c0_35 = arith.constant 0 : index
    %118 = vector.load %arg5[%c0_34, %c0_35] : memref<384x256xbf16, #tpu.memory_space<vmem>>, vector<384x256xbf16>
    %cst_36 = arith.constant dense<0.000000e+00> : vector<32x256xf32>
    %119 = tpu.matmul %117, %118, %cst_36 {dimension_numbers = #tpu.dot_dimension_numbers<[1], [0], [0], [1], [0, 0, 1, 1], [], []>} : vector<32x384xbf16>, vector<384x256xbf16>, vector<32x256xf32> -> vector<32x256xf32>
    %120 = vector.extract_strided_slice %119 {offsets = [0, 0], sizes = [32, 128], strides = [1, 1]} : vector<32x256xf32> to vector<32x128xf32>
    %121 = vector.extract_strided_slice %119 {offsets = [0, 128], sizes = [32, 128], strides = [1, 1]} : vector<32x256xf32> to vector<32x128xf32>
    %cst_37 = arith.constant dense<0.000000e+00> : vector<128xf32>
    %122 = vector.multi_reduction <add>, %120, %cst_37 [0] : vector<32x128xf32> to vector<128xf32>
    %123 = vector.shape_cast %122 : vector<128xf32> to vector<1x128xf32>
    %cst_38 = arith.constant dense<0.000000e+00> : vector<128xf32>
    %124 = vector.multi_reduction <add>, %121, %cst_38 [0] : vector<32x128xf32> to vector<128xf32>
    %125 = vector.shape_cast %124 : vector<128xf32> to vector<1x128xf32>
    %126 = tpu.concatenate %123, %125 in 0 : vector<1x128xf32>, vector<1x128xf32> -> vector<2x128xf32>
    %cst_39 = arith.constant dense<0.000000e+00> : vector<2x128xf32>
    %127 = tpu.matmul %126, %0, %cst_39 {dimension_numbers = #tpu.dot_dimension_numbers<[1], [0], [0], [1], [0, 0, 1, 1], [], []>} : vector<2x128xf32>, vector<128x128xf32>, vector<2x128xf32> -> vector<2x128xf32>
    %128 = vector.extract_strided_slice %127 {offsets = [0, 0], sizes = [1, 128], strides = [1, 1]} : vector<2x128xf32> to vector<1x128xf32>
    %129 = vector.broadcast %128 : vector<1x128xf32> to vector<32x128xf32>
    %130 = arith.subf %120, %129 : vector<32x128xf32>
    %131 = vector.extract_strided_slice %127 {offsets = [1, 0], sizes = [1, 128], strides = [1, 1]} : vector<2x128xf32> to vector<1x128xf32>
    %132 = vector.broadcast %131 : vector<1x128xf32> to vector<32x128xf32>
    %133 = arith.subf %121, %132 : vector<32x128xf32>
    %134 = arith.mulf %130, %130 : vector<32x128xf32>
    %cst_40 = arith.constant dense<0.000000e+00> : vector<128xf32>
    %135 = vector.multi_reduction <add>, %134, %cst_40 [0] : vector<32x128xf32> to vector<128xf32>
    %136 = vector.shape_cast %135 : vector<128xf32> to vector<1x128xf32>
    %137 = arith.mulf %133, %133 : vector<32x128xf32>
    %cst_41 = arith.constant dense<0.000000e+00> : vector<128xf32>
    %138 = vector.multi_reduction <add>, %137, %cst_41 [0] : vector<32x128xf32> to vector<128xf32>
    %139 = vector.shape_cast %138 : vector<128xf32> to vector<1x128xf32>
    %140 = tpu.concatenate %136, %139 in 0 : vector<1x128xf32>, vector<1x128xf32> -> vector<2x128xf32>
    %cst_42 = arith.constant dense<0.000000e+00> : vector<2x128xf32>
    %141 = tpu.matmul %140, %0, %cst_42 {dimension_numbers = #tpu.dot_dimension_numbers<[1], [0], [0], [1], [0, 0, 1, 1], [], []>} : vector<2x128xf32>, vector<128x128xf32>, vector<2x128xf32> -> vector<2x128xf32>
    %cst_43 = arith.constant 9.99999974E-6 : f32
    %142 = vector.broadcast %cst_43 : f32 to vector<2x128xf32>
    %143 = arith.addf %141, %142 : vector<2x128xf32>
    %144 = math.rsqrt %143 : vector<2x128xf32>
    %145 = vector.extract_strided_slice %144 {offsets = [0, 0], sizes = [1, 128], strides = [1, 1]} : vector<2x128xf32> to vector<1x128xf32>
    %146 = arith.mulf %103, %145 : vector<1x128xf32>
    %147 = vector.broadcast %146 : vector<1x128xf32> to vector<32x128xf32>
    %148 = arith.mulf %130, %147 : vector<32x128xf32>
    %149 = vector.broadcast %104 : vector<1x128xf32> to vector<32x128xf32>
    %150 = arith.addf %148, %149 : vector<32x128xf32>
    %151 = vector.extract_strided_slice %144 {offsets = [1, 0], sizes = [1, 128], strides = [1, 1]} : vector<2x128xf32> to vector<1x128xf32>
    %152 = arith.mulf %107, %151 : vector<1x128xf32>
    %153 = vector.broadcast %152 : vector<1x128xf32> to vector<32x128xf32>
    %154 = arith.mulf %133, %153 : vector<32x128xf32>
    %155 = vector.broadcast %108 : vector<1x128xf32> to vector<32x128xf32>
    %156 = arith.addf %154, %155 : vector<32x128xf32>
    %cst_44 = arith.constant 0.000000e+00 : f32
    %157 = vector.broadcast %cst_44 : f32 to vector<32x128xf32>
    %158 = arith.maximumf %150, %157 : vector<32x128xf32>
    %cst_45 = arith.constant dense<0.000000e+00> : vector<128xf32>
    %159 = vector.multi_reduction <add>, %158, %cst_45 [0] : vector<32x128xf32> to vector<128xf32>
    %160 = vector.shape_cast %159 : vector<128xf32> to vector<1x128xf32>
    %cst_46 = arith.constant dense<0.000000e+00> : vector<1x128xf32>
    %161 = tpu.matmul %160, %0, %cst_46 {dimension_numbers = #tpu.dot_dimension_numbers<[1], [0], [0], [1], [0, 0, 1, 1], [], []>} : vector<1x128xf32>, vector<128x128xf32>, vector<1x128xf32> -> vector<1x128xf32>
    %162 = vector.broadcast %161 : vector<1x128xf32> to vector<32x128xf32>
    %163 = arith.subf %158, %162 : vector<32x128xf32>
    %164 = arith.mulf %163, %163 : vector<32x128xf32>
    %cst_47 = arith.constant dense<0.000000e+00> : vector<128xf32>
    %165 = vector.multi_reduction <add>, %164, %cst_47 [0] : vector<32x128xf32> to vector<128xf32>
    %166 = vector.shape_cast %165 : vector<128xf32> to vector<1x128xf32>
    %cst_48 = arith.constant dense<0.000000e+00> : vector<1x128xf32>
    %167 = tpu.matmul %166, %0, %cst_48 {dimension_numbers = #tpu.dot_dimension_numbers<[1], [0], [0], [1], [0, 0, 1, 1], [], []>} : vector<1x128xf32>, vector<128x128xf32>, vector<1x128xf32> -> vector<1x128xf32>
    %cst_49 = arith.constant 9.99999974E-6 : f32
    %168 = vector.broadcast %cst_49 : f32 to vector<1x128xf32>
    %169 = arith.addf %167, %168 : vector<1x128xf32>
    %170 = math.rsqrt %169 : vector<1x128xf32>
    %171 = arith.mulf %105, %170 : vector<1x128xf32>
    %172 = vector.broadcast %171 : vector<1x128xf32> to vector<32x128xf32>
    %173 = arith.mulf %163, %172 : vector<32x128xf32>
    %174 = vector.broadcast %106 : vector<1x128xf32> to vector<32x128xf32>
    %175 = arith.addf %173, %174 : vector<32x128xf32>
    %cst_50 = arith.constant 0.000000e+00 : f32
    %176 = vector.broadcast %cst_50 : f32 to vector<32x128xf32>
    %177 = arith.maximumf %175, %176 : vector<32x128xf32>
    %178 = arith.addf %177, %156 : vector<32x128xf32>
    %cst_51 = arith.constant dense<0.000000e+00> : vector<128xf32>
    %179 = vector.multi_reduction <add>, %178, %cst_51 [0] : vector<32x128xf32> to vector<128xf32>
    %180 = vector.shape_cast %179 : vector<128xf32> to vector<1x128xf32>
    %cst_52 = arith.constant dense<0.000000e+00> : vector<1x128xf32>
    %181 = tpu.matmul %180, %0, %cst_52 {dimension_numbers = #tpu.dot_dimension_numbers<[1], [0], [0], [1], [0, 0, 1, 1], [], []>} : vector<1x128xf32>, vector<128x128xf32>, vector<1x128xf32> -> vector<1x128xf32>
    %182 = vector.broadcast %181 : vector<1x128xf32> to vector<32x128xf32>
    %183 = arith.subf %178, %182 : vector<32x128xf32>
    %184 = arith.mulf %183, %183 : vector<32x128xf32>
    %cst_53 = arith.constant dense<0.000000e+00> : vector<128xf32>
    %185 = vector.multi_reduction <add>, %184, %cst_53 [0] : vector<32x128xf32> to vector<128xf32>
    %186 = vector.shape_cast %185 : vector<128xf32> to vector<1x128xf32>
    %cst_54 = arith.constant dense<0.000000e+00> : vector<1x128xf32>
    %187 = tpu.matmul %186, %0, %cst_54 {dimension_numbers = #tpu.dot_dimension_numbers<[1], [0], [0], [1], [0, 0, 1, 1], [], []>} : vector<1x128xf32>, vector<128x128xf32>, vector<1x128xf32> -> vector<1x128xf32>
    %cst_55 = arith.constant 9.99999974E-6 : f32
    %188 = vector.broadcast %cst_55 : f32 to vector<1x128xf32>
    %189 = arith.addf %187, %188 : vector<1x128xf32>
    %190 = math.rsqrt %189 : vector<1x128xf32>
    %191 = arith.mulf %105, %190 : vector<1x128xf32>
    %192 = vector.broadcast %191 : vector<1x128xf32> to vector<32x128xf32>
    %193 = arith.mulf %183, %192 : vector<32x128xf32>
    %194 = vector.broadcast %106 : vector<1x128xf32> to vector<32x128xf32>
    %195 = arith.addf %193, %194 : vector<32x128xf32>
    %cst_56 = arith.constant 0.000000e+00 : f32
    %196 = vector.broadcast %cst_56 : f32 to vector<32x128xf32>
    %197 = arith.maximumf %195, %196 : vector<32x128xf32>
    %c0_57 = arith.constant 0 : index
    %c0_58 = arith.constant 0 : index
    %198 = vector.load %arg7[%c0_57, %c0_58] : memref<32x128xf32, #tpu.memory_space<vmem>>, vector<32x128xf32>
    tpu.vector_store %arg7[%c0_57, %c0_58], %197 {strides = array<i32>} : memref<32x128xf32, #tpu.memory_space<vmem>>, vector<32x128xf32>,
    return
  }
}

</mosaic_0001>

<bundles_post_ra>
// kernel: rethpath_forward.1
= control target key start
LH: loop header
LB: loop body
LE: loop exit
PB: predicated region body
PF: predicated region fallthrough
CT: control target
= control target key end

     0   :  { %12 = vsyncpa [#allocation3], 0  ;;  %s2276_s27 = smov [#allocation2]   ;;  %s2277_s29 = smov 128   ;;  %s3444_s0 = inlined_call_operand.vmem [shape: bf16[32,128], index: 0, kind: input, shape index: {}]   ;;  %s3445_s1 = inlined_call_operand.vmem [shape: f32[32,2], index: 1, kind: input, shape index: {}]   ;;  %s3446_s2 = inlined_call_operand.hbm [shape: f32[128,128], index: 2, kind: input, shape index: {}]   ;;  %s3447_s3 = inlined_call_operand.vmem [shape: bf16[384,256], index: 3, kind: input, shape index: {}]   ;;  %s3448_s4 = inlined_call_operand.vmem [shape: f32[6,128], index: 4, kind: input, shape index: {}]   ;;  %s3449_s5 = inlined_call_operand.vmem [shape: bf16[384,256], index: 5, kind: input, shape index: {}]   ;;  %s3450_s6 = inlined_call_operand.vmem [shape: f32[6,128], index: 6, kind: input, shape index: {}]   ;;  %s3451_s7 = inlined_call_operand.vmem [shape: f32[32,128], index: 7, kind: output, shape index: {}]  }
   0x1   :  { %s21_s26 = sshll.u32 %s3446_s2, 4  ;;  %s23_s28 = sshll.u32 %s2276_s27, 4  ;;  %s22_s26 = int_to_ptr.hbm [resolvable:$true] %s21_s26  ;;  %s24_s28 = int_to_ptr.vmem [resolvable:$true] %s23_s28 }
   0x2   :  { %s2278_s30 = smov 8  }
   0x3   :  { %29 = dma.hbm_to_vmem [thread:$0]  %s22_s26, 2048, %s24_s28, [#allocation3], %s2277_s29, %s2277_s29, %s2278_s30  }
   0x4   :  { %2274 = dma.done.wait [#allocation3], 2048  }
   0x5   :  { %2275 = vsyncadd [#allocation3], 4294965248  ;;  %v2279_v0 = vmov 0   ;;  %v2280_v1 = vmov 1   ;;  %v58_v2 = vld [vmem:[%s3445_s1] sm:$0xff]  ;;  %v2331_v3 = vld [vmem:[%s3445_s1 + $0x10] sm:$0xff] }
   0x6   :  { %2217 = vset.pattern.permute.xlu0 %v2279_v0  ;;  %2218 = vset.pattern.permute.xlu1 %v2279_v0  ;;  %v1852_v4 = vld [vmem:[%s3447_s3 + $0xf0] sm:$0xf]  ;;  %v2147_v5 = vld [vmem:[%s3447_s3 + $0xf4] sm:$0xf0]  ;;  %v1844_v7 = vld [vmem:[%s3447_s3 + $0xe0] sm:$0xf] }
   0x7   :  { %2219 = vset.pattern.permute.xlu2 %v2280_v1  ;;  %84 = vperm.xlu0 %2217, %v58_v2   ;;  %v1853_v6 = vor.u32 %v2147_v5, %v1852_v4  ;;  %v2145_v8 = vld [vmem:[%s3447_s3 + $0xe4] sm:$0xf0]  ;;  %v1836_v10 = vld [vmem:[%s3447_s3 + $0xd0] sm:$0xf]  ;;  %v2143_v11 = vld [vmem:[%s3447_s3 + $0xd4] sm:$0xf0] }
   0x8   :  { %94 = vperm.xlu1 %2218, %v2331_v3   ;;  %120 = vperm.xlu2 %2219, %v58_v2   ;;  %v1845_v9 = vor.u32 %v2145_v8, %v1844_v7  ;;  %v1916_v12 = vld [vmem:[%s3447_s3 + $0x170] sm:$0xf]  ;;  %v2163_v13 = vld [vmem:[%s3447_s3 + $0x174] sm:$0xf0]  ;;  %v59_v16 = vld [vmem:[%s3445_s1 + $0x8] sm:$0xff]  ;;  %v1837_v24 = vor.u32 %v2143_v11, %v1836_v10  ;;  %v75_v10 = vlaneseq  ;;  %vm599_vm2 = vcmask 1040384  }
   0x9   :  { %486 = vmatpush.bf16.msra.mxu1 %v1853_v6  ;;  %v1788_v14 = vld [vmem:[%s3447_s3 + $0x70] sm:$0xf]  ;;  %v2131_v15 = vld [vmem:[%s3447_s3 + $0x74] sm:$0xf0]  ;;  %v1917_v18 = vor.u32 %v2163_v13, %v1916_v12  ;;  %v1908_v20 = vld [vmem:[%s3447_s3 + $0x160] sm:$0xf] }
   0xa   :  { %v61_v17 = vld [vmem:[%s3445_s1 + $0x18] sm:$0xff]  ;;  %v1789_v19 = vor.u32 %v2131_v15, %v1788_v14  ;;  %v2161_v21 = vld [vmem:[%s3447_s3 + $0x164] sm:$0xf0]  ;;  %v2130_v22 = vld [vmem:[%s3447_s3 + $0x74] sm:$0xf] }
   0xb   :  { %v1790_v23 = vld [vmem:[%s3447_s3 + $0x78] sm:$0xf0]  ;;  %v1828_v25 = vld [vmem:[%s3447_s3 + $0xc0] sm:$0xf]  ;;  %505 = vmatpush.bf16.msra.mxu2 %v1917_v18  ;;  %v1909_v26 = vor.u32 %v2161_v21, %v1908_v20  ;;  %v2129_v29 = vld [vmem:[%s3447_s3 + $0x64] sm:$0xf0] }
   0xc   :  { %v1793_v27 = vor.u32 %v2130_v22, %v1790_v23  ;;  %v1780_v28 = vld [vmem:[%s3447_s3 + $0x60] sm:$0xf]  ;;  %v2141_v30 = vld [vmem:[%s3447_s3 + $0xc4] sm:$0xf0]  ;;  %v1900_v31 = vld [vmem:[%s3447_s3 + $0x150] sm:$0xf]  ;;  %467 = vmatpush.bf16.msra.mxu0 %v1789_v19 }
   0xd   :  { %487 = vmatpush.bf16.msra.mxu1 %v1845_v9  ;;  %v2159_v32 = vld [vmem:[%s3447_s3 + $0x154] sm:$0xf0]  ;;  %v1781_v33 = vor.u32 %v2129_v29, %v1780_v28  ;;  %v2128_v34 = vld [vmem:[%s3447_s3 + $0x64] sm:$0xf]  ;;  %v1782_v35 = vld [vmem:[%s3447_s3 + $0x68] sm:$0xf0]  ;;  %v1829_v39 = vor.u32 %v2141_v30, %v1828_v25 }
   0xe   :  { %v1820_v36 = vld [vmem:[%s3447_s3 + $0xb0] sm:$0xf]  ;;  %v2139_v37 = vld [vmem:[%s3447_s3 + $0xb4] sm:$0xf0]  ;;  %524 = vmatpush.bf16.msra.mxu3 %v1793_v27  ;;  %v1785_v38 = vor.u32 %v2128_v34, %v1782_v35  ;;  %v1901_v40 = vor.u32 %v2159_v32, %v1900_v31  ;;  %v2126_v43 = vld [vmem:[%s3447_s3 + $0x54] sm:$0xf] }
   0xf   :  { %89 = vperm.xlu0 %2217, %v59_v16   ;;  %506 = vmatpush.bf16.msra.mxu2 %v1909_v26  ;;  %v1772_v41 = vld [vmem:[%s3447_s3 + $0x50] sm:$0xf]  ;;  %v2127_v42 = vld [vmem:[%s3447_s3 + $0x54] sm:$0xf0]  ;;  %v1892_v44 = vld [vmem:[%s3447_s3 + $0x140] sm:$0xf]  ;;  %v1821_v49 = vor.u32 %v2139_v37, %v1820_v36 }
  0x10   :  { %99 = vperm.xlu1 %2218, %v61_v17   ;;  %124 = vperm.xlu2 %2219, %v59_v16   ;;  %v2157_v45 = vld [vmem:[%s3447_s3 + $0x144] sm:$0xf0]  ;;  %v1774_v46 = vld [vmem:[%s3447_s3 + $0x58] sm:$0xf0]  ;;  %v1773_v47 = vor.u32 %v2127_v42, %v1772_v41  ;;  %v1812_v51 = vld [vmem:[%s3447_s3 + $0xa0] sm:$0xf] }
  0x11   :  { %488 = vmatpush.bf16.msra.mxu1 %v1837_v24  ;;  %468 = vmatpush.bf16.msra.mxu0 %v1781_v33  ;;  %v1777_v48 = vor.u32 %v2126_v43, %v1774_v46  ;;  %v1893_v50 = vor.u32 %v2157_v45, %v1892_v44  ;;  %v2137_v52 = vld [vmem:[%s3447_s3 + $0xa4] sm:$0xf0]  ;;  %v1804_v54 = vld [vmem:[%s3447_s3 + $0x90] sm:$0xf]  ;;  %v2135_v55 = vld [vmem:[%s3447_s3 + $0x94] sm:$0xf0] }
  0x12   :  { %525 = vmatpush.bf16.msra.mxu3 %v1785_v38  ;;  %v1813_v53 = vor.u32 %v2137_v52, %v1812_v51  ;;  %v1805_v56 = vor.u32 %v2135_v55, %v1804_v54  ;;  %v1796_v57 = vld [vmem:[%s3447_s3 + $0x80] sm:$0xf]  ;;  %v2133_v58 = vld [vmem:[%s3447_s3 + $0x84] sm:$0xf0]  ;;  %v1884_v0 = vld [vmem:[%s3447_s3 + $0x130] sm:$0xf] }
  0x13   :  { %507 = vmatpush.bf16.msra.mxu2 %v1901_v40  ;;  %v1797_v59 = vor.u32 %v2133_v58, %v1796_v57  ;;  %v2454_v60 = vld [vmem:[%s3444_s0] sm:$0xff]  ;;  %v2125_v62 = vld [vmem:[%s3447_s3 + $0x44] sm:$0xf0]  ;;  %v1766_v4 = vld [vmem:[%s3447_s3 + $0x48] sm:$0xf0]  ;;  %v2511_v23 = vshrl.u32 %v75_v10, 7 }
  0x14   :  { %v1764_v61 = vld [vmem:[%s3447_s3 + $0x40] sm:$0xf]  ;;  %v2124_v2 = vld [vmem:[%s3447_s3 + $0x44] sm:$0xf]  ;;  %v2162_v5 = vld [vmem:[%s3447_s3 + $0x174] sm:$0xf] }
  0x15   :  { %489 = vmatpush.bf16.msra.mxu1 %v1829_v39  ;;  %469 = vmatpush.bf16.msra.mxu0 %v1773_v47  ;;  %v1765_v63 = vor.u32 %v2125_v62, %v1764_v61  ;;  %v1918_v6 = vld [vmem:[%s3447_s3 + $0x178] sm:$0xf0]  ;;  %v1769_v7 = vor.u32 %v2124_v2, %v1766_v4  ;;  %v2484_v9 = vld [vmem:[%s3444_s0] sm:$0xff]   ;;  %v1756_v11 = vld [vmem:[%s3447_s3 + $0x30] sm:$0xf]  ;;  %vm114_vm0 = vcmp.lt.s32.totalorder %v2511_v23, 7 }
  0x16   :  { %526 = vmatpush.bf16.msra.mxu3 %v1777_v48  ;;  %v1921_v8 = vor.u32 %v2162_v5, %v1918_v6  ;;  %v2123_v12 = vld [vmem:[%s3447_s3 + $0x34] sm:$0xf0]  ;;  %v1876_v13 = vld [vmem:[%s3447_s3 + $0x120] sm:$0xf]  ;;  %v2153_v15 = vld [vmem:[%s3447_s3 + $0x124] sm:$0xf0]  ;;  %v67_v18 = vunpack.c.h.bf16 %v2484_v9  ;;  %v66_v25 = vunpack.c.l.bf16 %v2484_v9 }
  0x17   :  { %2220 = vset.pattern.permute.xlu0 %v2280_v1  ;;  %508 = vmatpush.bf16.msra.mxu2 %v1893_v50  ;;  %v1757_v14 = vor.u32 %v2123_v12, %v1756_v11  ;;  %v2122_v16 = vld [vmem:[%s3447_s3 + $0x34] sm:$0xf]  ;;  %v1877_v19 = vor.u32 %v2153_v15, %v1876_v13  ;;  %v2160_v21 = vld [vmem:[%s3447_s3 + $0x164] sm:$0xf]  ;;  %v1910_v22 = vld [vmem:[%s3447_s3 + $0x168] sm:$0xf0] }
  0x18   :  { %2221 = vset.pattern.permute.xlu1 %v2280_v1  ;;  %128 = vperm.xlu0 %2220, %v2331_v3   ;;  %v2155_v1 = vld [vmem:[%s3447_s3 + $0x134] sm:$0xf0]  ;;  %v1913_v24 = vor.u32 %v2160_v21, %v1910_v22  ;;  %v1748_v26 = vld [vmem:[%s3447_s3 + $0x20] sm:$0xf]  ;;  %v2121_v27 = vld [vmem:[%s3447_s3 + $0x24] sm:$0xf0] }
  0x19   :  { %132 = vperm.xlu1 %2221, %v61_v17   ;;  %490 = vmatpush.bf16.msra.mxu1 %v1821_v49  ;;  %v1885_v3 = vor.u32 %v2155_v1, %v1884_v0  ;;  %v1758_v17 = vld [vmem:[%s3447_s3 + $0x38] sm:$0xf0]  ;;  %v1868_v28 = vld [vmem:[%s3447_s3 + $0x110] sm:$0xf]  ;;  %v1749_v29 = vor.u32 %v2121_v27, %v1748_v26  ;;  %v2151_v30 = vld [vmem:[%s3447_s3 + $0x114] sm:$0xf0] }
  0x1a   :  { %470 = vmatpush.bf16.msra.mxu0 %v1765_v63  ;;  %527 = vmatpush.bf16.msra.mxu3 %v1769_v7  ;;  %v1761_v20 = vor.u32 %v2122_v16, %v1758_v17  ;;  %v2120_v31 = vld [vmem:[%s3447_s3 + $0x24] sm:$0xf]  ;;  %v1750_v32 = vld [vmem:[%s3447_s3 + $0x28] sm:$0xf0]  ;;  %v2534_v33 = vrot.slane %v66_v25, 1  ;;  %v111_v34 = vrot.slane %v67_v18, 1  ;;  %v1869_v35 = vor.u32 %v2151_v30, %v1868_v28 }
  0x1b   :  { %509 = vmatpush.bf16.msra.mxu2 %v1885_v3  ;;  %v1753_v36 = vor.u32 %v2120_v31, %v1750_v32  ;;  %v2158_v37 = vld [vmem:[%s3447_s3 + $0x154] sm:$0xf]  ;;  %v1902_v38 = vld [vmem:[%s3447_s3 + $0x158] sm:$0xf0]  ;;  %v2548_v39 = vld [vmem:[%s3444_s0 + $0x8] sm:$0xff]   ;;  %vm77_vm1 = vcmp.lt.s32.totalorder %v2511_v23, 1 }
  0x1c   :  { %v1905_v40 = vor.u32 %v2158_v37, %v1902_v38  ;;  %v68_v41 = vunpack.c.l.bf16 %v2548_v39  ;;  %v1740_v42 = vld [vmem:[%s3447_s3 + $0x10] sm:$0xf]  ;;  %v2119_v43 = vld [vmem:[%s3447_s3 + $0x14] sm:$0xf0]  ;;  %v1860_v44 = vld [vmem:[%s3447_s3 + $0x100] sm:$0xf]  ;;  %v117_v49 = vsel %vm114_vm0, %v2534_v33, %v111_v34 }
  0x1d   :  { %491 = vmatpush.bf16.msra.mxu1 %v1813_v53  ;;  %v1741_v45 = vor.u32 %v2119_v43, %v1740_v42  ;;  %v2149_v46 = vld [vmem:[%s3447_s3 + $0x104] sm:$0xf0]  ;;  %v2118_v47 = vld [vmem:[%s3447_s3 + $0x14] sm:$0xf]  ;;  %v1742_v48 = vld [vmem:[%s3447_s3 + $0x18] sm:$0xf0] }
  0x1e   :  { %471 = vmatpush.bf16.msra.mxu0 %v1757_v14  ;;  %528 = vmatpush.bf16.msra.mxu3 %v1761_v20  ;;  %v1861_v51 = vor.u32 %v2149_v46, %v1860_v44  ;;  %v1745_v52 = vor.u32 %v2118_v47, %v1742_v48  ;;  %v2156_v53 = vld [vmem:[%s3447_s3 + $0x144] sm:$0xf]  ;;  %v1894_v54 = vld [vmem:[%s3447_s3 + $0x148] sm:$0xf0]  ;;  %v1732_v58 = vld [vmem:[%s3447_s3] sm:$0xf] }
  0x1f   :  { %510 = vmatpush.bf16.msra.mxu2 %v1877_v19  ;;  %v1897_v55 = vor.u32 %v2156_v53, %v1894_v54  ;;  %v2587_v57 = vld [vmem:[%s3444_s0 + $0x8] sm:$0xff]  ;;  %v2116_v63 = vld [vmem:[%s3447_s3 + $0x4] sm:$0xf]  ;;  %v2154_v1 = vld [vmem:[%s3447_s3 + $0x134] sm:$0xf]  ;;  %v71_v42 = vrot.slane %v66_v25, 7 }
  0x20   :  { %v1734_v0 = vld [vmem:[%s3447_s3 + $0x8] sm:$0xf0]  ;;  %v1886_v3 = vld [vmem:[%s3447_s3 + $0x138] sm:$0xf0]  ;;  %v2146_v6 = vld [vmem:[%s3447_s3 + $0xf4] sm:$0xf] }
  0x21   :  { %492 = vmatpush.bf16.msra.mxu1 %v1805_v56  ;;  %v2582_v56 = vrot.slane %v68_v41, 1  ;;  %v1737_v2 = vor.u32 %v2116_v63, %v1734_v0  ;;  %v1889_v4 = vor.u32 %v2154_v1, %v1886_v3  ;;  %v1854_v7 = vld [vmem:[%s3447_s3 + $0xf8] sm:$0xf0]  ;;  %v1878_v12 = vld [vmem:[%s3447_s3 + $0x128] sm:$0xf0] }
  0x22   :  { %472 = vmatpush.bf16.msra.mxu0 %v1749_v29  ;;  %529 = vmatpush.bf16.msra.mxu3 %v1753_v36  ;;  %v1857_v11 = vor.u32 %v2146_v6, %v1854_v7  ;;  %v2144_v16 = vld [vmem:[%s3447_s3 + $0xe4] sm:$0xf]  ;;  %v1846_v17 = vld [vmem:[%s3447_s3 + $0xe8] sm:$0xf0]  ;;  %v2150_v19 = vld [vmem:[%s3447_s3 + $0x114] sm:$0xf]  ;;  %v69_v36 = vunpack.c.h.bf16 %v2548_v39 }
  0x23   :  { %511 = vmatpush.bf16.msra.mxu2 %v1869_v35  ;;  %v116_v5 = vsel %vm114_vm0, %v111_v34, %v2582_v56  ;;  %v1849_v22 = vor.u32 %v2144_v16, %v1846_v17  ;;  %v2142_v28 = vld [vmem:[%s3447_s3 + $0xd4] sm:$0xf]  ;;  %v1838_v29 = vld [vmem:[%s3447_s3 + $0xd8] sm:$0xf0]  ;;  %v2148_v30 = vld [vmem:[%s3447_s3 + $0x104] sm:$0xf] }
  0x24   :  { %v1841_v31 = vor.u32 %v2142_v28, %v1838_v29  ;;  %v1862_v32 = vld [vmem:[%s3447_s3 + $0x108] sm:$0xf0]  ;;  %v2140_v37 = vld [vmem:[%s3447_s3 + $0xc4] sm:$0xf]  ;;  %v74_v43 = vrot.slane %v69_v36, 7 }
  0x25   :  { %493 = vmatpush.bf16.msra.mxu1 %v1797_v59  ;;  %v2117_v59 = vld [vmem:[%s3447_s3 + $0x4] sm:$0xf0]  ;;  %v1865_v35 = vor.u32 %v2148_v30, %v1862_v32  ;;  %v1830_v38 = vld [vmem:[%s3447_s3 + $0xc8] sm:$0xf0]  ;;  %v2138_v44 = vld [vmem:[%s3447_s3 + $0xb4] sm:$0xf] }
  0x26   :  { %473 = vmatpush.bf16.msra.mxu0 %v1741_v45  ;;  %530 = vmatpush.bf16.msra.mxu3 %v1745_v52  ;;  %v1733_v62 = vor.u32 %v2117_v59, %v1732_v58  ;;  %v1822_v45 = vld [vmem:[%s3447_s3 + $0xb8] sm:$0xf0]  ;;  %v2136_v25 = vld [vmem:[%s3447_s3 + $0xa4] sm:$0xf]  ;;  %v72_v52 = vrot.slane %v67_v18, 7 }
  0x27   :  { %512 = vmatpush.bf16.msra.mxu2 %v1861_v51  ;;  %v1825_v48 = vor.u32 %v2138_v44, %v1822_v45  ;;  %v81_v51 = vsel %vm77_vm1, %v74_v43, %v71_v42  ;;  %v2134_v54 = vld [vmem:[%s3447_s3 + $0x94] sm:$0xf]  ;;  %v2132_v9 = vld [vmem:[%s3447_s3 + $0x84] sm:$0xf]  ;;  %v1798_v18 = vld [vmem:[%s3447_s3 + $0x88] sm:$0xf0] }
  0x28   :  { %494 = vmatmul.bf16.vlgmr.msra.gmra.mxu1 %v2454_v60  ;;  %v80_v59 = vsel %vm77_vm1, %v71_v42, %v72_v52  ;;  %v2766_v44 = vld [vmem:[#allocation2 + $0x50] sm:$0xff] }
  0x29   :  { %562 = vmatpush.bf16.msrb.mxu1 %v1921_v8  ;;  %v2152_v8 = vld [vmem:[%s3447_s3 + $0x124] sm:$0xf] }
  0x2a   :  { %474 = vmatpush.bf16.msra.mxu0 %v1733_v62  ;;  %531 = vmatpush.bf16.msra.mxu3 %v1737_v2  ;;  %v1881_v14 = vor.u32 %v2152_v8, %v1878_v12  ;;  %v1801_v2 = vor.u32 %v2132_v9, %v1798_v18  ;;  %v2812_v9 = vld [vmem:[#allocation2 + $0x18] sm:$0xff] }
  0x2d   :  { %563 = vmatpush.bf16.msrb.mxu1 %v1913_v24  ;;  %v1870_v24 = vld [vmem:[%s3447_s3 + $0x118] sm:$0xf0] }
  0x2e   :  { %543 = vmatpush.bf16.msrb.mxu0 %v1857_v11  ;;  %v1873_v26 = vor.u32 %v2150_v19, %v1870_v24 }
  0x31   :  { %564 = vmatpush.bf16.msrb.mxu1 %v1905_v40  ;;  %v1833_v40 = vor.u32 %v2140_v37, %v1830_v38  ;;  %v2735_v37 = vld [vmem:[#allocation2 + $0x78] sm:$0xff]  ;;  %v2738_v38 = vld [vmem:[#allocation2 + $0x70] sm:$0xff] }
  0x32   :  { %544 = vmatpush.bf16.msrb.mxu0 %v1849_v22  ;;  %601 = vmatpush.msrb.mxu2 %v2735_v37 }
  0x33   :  { %658 = vmatpush.msrb.mxu3 %v2735_v37 }
  0x34   :  { %602 = vmatpush.msrb.mxu2 %v2738_v38 }
  0x35   :  { %565 = vmatpush.bf16.msrb.mxu1 %v1897_v55  ;;  %v1806_v55 = vld [vmem:[%s3447_s3 + $0x98] sm:$0xf0]  ;;  %659 = vmatpush.msrb.mxu3 %v2738_v38 }
  0x36   :  { %545 = vmatpush.bf16.msrb.mxu0 %v1841_v31 }
  0x38   :  { %499 = vmatmul.bf16.gmra.mxu1 %v2587_v57 }
  0x39   :  { %566 = vmatpush.bf16.msrb.mxu1 %v1889_v4  ;;  %v113_v4 = vrot.slane %v69_v36, 1 }
  0x3a   :  { %546 = vmatpush.bf16.msrb.mxu0 %v1833_v40  ;;  %v2753_v40 = vld [vmem:[#allocation2 + $0x60] sm:$0xff] }
  0x3b   :  { %v115_v11 = vsel %vm114_vm0, %v2582_v56, %v113_v4 }
  0x3d   :  { %567 = vmatpush.bf16.msrb.mxu1 %v1881_v14 }
  0x3e   :  { %547 = vmatpush.bf16.msrb.mxu0 %v1825_v48 }
  0x41   :  { %568 = vmatpush.bf16.msrb.mxu1 %v1873_v26 }
  0x45   :  { %569 = vmatpush.bf16.msrb.mxu1 %v1865_v35 }
  0x49   :  { %764 = vmatpush.msra.mxu1 %v2735_v37 }
  0x4b   :  { %765 = vmatpush.msra.mxu1 %v2738_v38 }
  0x62   :  { %v2572_v50 = vpop.permute.xlu2 %120 }
  0x63   :  { %v135_v61 = vmul.f32 %v2572_v50, %v117_v49  ;;  %v1814_v49 = vld [vmem:[%s3447_s3 + $0xa8] sm:$0xf0] }
  0x64   :  { %v1817_v53 = vor.u32 %v2136_v25, %v1814_v49  ;;  %v2773_v25 = vld [vmem:[#allocation2 + $0x48] sm:$0xff] }
  0x65   :  { %v139_v10 = vpack.c.bf16 %v135_v61, %v135_v61  ;;  %v1809_v61 = vor.u32 %v2134_v54, %v1806_v55  ;;  %v2795_v54 = vld [vmem:[#allocation2 + $0x30] sm:$0xff] }
  0x66   :  { %548 = vmatpush.bf16.msrb.mxu0 %v1817_v53 }
  0x67   :  { %v171_v20 = vunpack.c.l.b16 %v139_v10  ;;  %v118_v10 = vsel %vm114_vm0, %v113_v4, %v2534_v33 }
  0x6a   :  { %v2624_v13 = vpop.permute.xlu2 %124  ;;  %549 = vmatpush.bf16.msrb.mxu0 %v1809_v61  ;;  %v2807_v61 = vld [vmem:[#allocation2 + $0x20] sm:$0xff] }
  0x6b   :  { %v136_v15 = vmul.f32 %v2624_v13, %v116_v5  ;;  %v73_v5 = vrot.slane %v68_v41, 7 }
  0x6d   :  { %v140_v21 = vpack.c.bf16 %v136_v15, %v136_v15  ;;  %v79_v12 = vsel %vm77_vm1, %v72_v52, %v73_v5  ;;  %v78_v14 = vsel %vm77_vm1, %v73_v5, %v74_v43  ;;  %v2761_v43 = vld [vmem:[#allocation2 + $0x58] sm:$0xff] }
  0x6e   :  { %550 = vmatpush.bf16.msrb.mxu0 %v1801_v2  ;;  %v2787_v52 = vld [vmem:[#allocation2 + $0x38] sm:$0xff]  ;;  %v2823_v2 = vld [vmem:[#allocation2 + $0x8] sm:$0xff] }
  0x6f   :  { %v172_v27 = vunpack.c.l.b16 %v140_v21 }
  0x71   :  { %v175_v34 = vpack.c.b16 %v172_v27, %v171_v20 }
  0x73   :  { %513 = vmatmul.bf16.vlgmr.msra.gmra.mxu2 %v175_v34  ;;  %570 = vmatmul.bf16.vlgmr.msrb.gmra.mxu1 %v175_v34 }
  0x79   :  { %v2667_v46 = vpop.permute.xlu0 %84 }
  0x7a   :  { %v2669_v47 = vpop.permute.xlu1 %94  ;;  %v102_v58 = vmul.f32 %v2667_v46, %v81_v51  ;;  %v2781_v51 = vld [vmem:[#allocation2 + $0x40] sm:$0xff] }
  0x7b   :  { %v104_v16 = vmul.f32 %v2669_v47, %v79_v12 }
  0x7c   :  { %v106_v0 = vpack.c.bf16 %v102_v58, %v102_v58 }
  0x7d   :  { %v108_v22 = vpack.c.bf16 %v104_v16, %v104_v16 }
  0x7e   :  { %v147_v6 = vunpack.c.l.b16 %v106_v0  ;;  %v2815_v0 = vld [vmem:[#allocation2 + $0x10] sm:$0xff] }
  0x7f   :  { %v149_v27 = vunpack.c.l.b16 %v108_v22 }
  0x81   :  { %v2696_v62 = vpop.permute.xlu0 %89 }
  0x82   :  { %v2698_v63 = vpop.permute.xlu1 %99  ;;  %v103_v1 = vmul.f32 %v2696_v62, %v80_v59  ;;  %v2801_v59 = vld [vmem:[#allocation2 + $0x28] sm:$0xff] }
  0x83   :  { %v105_v56 = vmul.f32 %v2698_v63, %v78_v14 }
  0x84   :  { %v107_v3 = vpack.c.bf16 %v103_v1, %v103_v1 }
  0x85   :  { %v109_v24 = vpack.c.bf16 %v105_v56, %v105_v56 }
  0x86   :  { %v148_v7 = vunpack.c.l.b16 %v107_v3 }
  0x87   :  { %v150_v28 = vunpack.c.l.b16 %v109_v24 }
  0x88   :  { %v151_v8 = vpack.c.b16 %v148_v7, %v147_v6  ;;  %v2833_v7 = vld [vmem:[#allocation2] sm:$0xff] }
  0x89   :  { %v152_v29 = vpack.c.b16 %v150_v28, %v149_v27 }
  0x8a   :  { %475 = vmatmul.bf16.vlgmr.msra.gmra.mxu0 %v151_v8  ;;  %532 = vmatmul.bf16.vlgmr.msra.gmra.mxu3 %v151_v8  ;;  %v2715_v41 = vpop.permute.xlu0 %128 }
  0x8b   :  { %v2713_v39 = vpop.permute.xlu1 %132  ;;  %v137_v33 = vmul.f32 %v2715_v41, %v115_v11  ;;  %726 = vmatpush.msra.mxu0 %v2735_v37 }
  0x8c   :  { %v138_v15 = vmul.f32 %v2713_v39, %v118_v10 }
  0x8d   :  { %v141_v19 = vpack.c.bf16 %v137_v33, %v137_v33  ;;  %727 = vmatpush.msra.mxu0 %v2738_v38 }
  0x8e   :  { %v142_v17 = vpack.c.bf16 %v138_v15, %v138_v15 }
  0x8f   :  { %v173_v21 = vunpack.c.l.b16 %v141_v19 }
  0x90   :  { %v174_v20 = vunpack.c.l.b16 %v142_v17 }
  0x92   :  { %v176_v26 = vpack.c.b16 %v174_v20, %v173_v21 }
  0x94   :  { %518 = vmatmul.bf16.gmra.mxu2 %v176_v26  ;;  %575 = vmatmul.bf16.gmra.mxu1 %v176_v26 }
  0x9a   :  { %480 = vmatmul.bf16.gmra.mxu0 %v152_v29  ;;  %537 = vmatmul.bf16.gmra.mxu3 %v152_v29 }
  0xa5   :  { %v2723_v30 = vpop.f32.mrf.mxu1 }
  0xaa   :  { %551 = vmatmul.bf16.vlgmr.msrb.gmra.mxu0 %v2454_v60 }
  0xad   :  { %v2725_v31 = vpop.f32.mrf.mxu1 }
  0xb5   :  { %v2731_v35 = vpop.f32.mrf.mxu1 }
  0xba   :  { %556 = vmatmul.bf16.gmra.mxu0 %v2587_v57  ;;  %v2747_v57 = vld [vmem:[#allocation2 + $0x68] sm:$0xff] }
  0xbb   :  { %603 = vmatpush.msrb.mxu2 %v2747_v57  ;;  %660 = vmatpush.msrb.mxu3 %v2747_v57 }
  0xbc   :  { %728 = vmatpush.msra.mxu0 %v2747_v57  ;;  %766 = vmatpush.msra.mxu1 %v2747_v57 }
  0xbd   :  { %604 = vmatpush.msrb.mxu2 %v2753_v40  ;;  %661 = vmatpush.msrb.mxu3 %v2753_v40  ;;  %v2759_v42 = vpop.f32.mrf.mxu1 }
  0xbe   :  { %729 = vmatpush.msra.mxu0 %v2753_v40  ;;  %767 = vmatpush.msra.mxu1 %v2753_v40 }
  0xbf   :  { %605 = vmatpush.msrb.mxu2 %v2761_v43  ;;  %662 = vmatpush.msrb.mxu3 %v2761_v43 }
  0xc0   :  { %730 = vmatpush.msra.mxu0 %v2761_v43  ;;  %768 = vmatpush.msra.mxu1 %v2761_v43 }
  0xc1   :  { %606 = vmatpush.msrb.mxu2 %v2766_v44  ;;  %663 = vmatpush.msrb.mxu3 %v2766_v44 }
  0xc2   :  { %731 = vmatpush.msra.mxu0 %v2766_v44  ;;  %769 = vmatpush.msra.mxu1 %v2766_v44 }
  0xc3   :  { %607 = vmatpush.msrb.mxu2 %v2773_v25  ;;  %664 = vmatpush.msrb.mxu3 %v2773_v25 }
  0xc4   :  { %732 = vmatpush.msra.mxu0 %v2773_v25  ;;  %770 = vmatpush.msra.mxu1 %v2773_v25 }
  0xc5   :  { %608 = vmatpush.msrb.mxu2 %v2781_v51  ;;  %665 = vmatpush.msrb.mxu3 %v2781_v51 }
  0xc6   :  { %733 = vmatpush.msra.mxu0 %v2781_v51  ;;  %771 = vmatpush.msra.mxu1 %v2781_v51 }
  0xc7   :  { %609 = vmatpush.msrb.mxu2 %v2787_v52  ;;  %666 = vmatpush.msrb.mxu3 %v2787_v52 }
  0xc8   :  { %734 = vmatpush.msra.mxu0 %v2787_v52  ;;  %772 = vmatpush.msra.mxu1 %v2787_v52 }
  0xc9   :  { %610 = vmatpush.msrb.mxu2 %v2795_v54  ;;  %667 = vmatpush.msrb.mxu3 %v2795_v54 }
  0xca   :  { %735 = vmatpush.msra.mxu0 %v2795_v54  ;;  %773 = vmatpush.msra.mxu1 %v2795_v54 }
  0xcb   :  { %611 = vmatpush.msrb.mxu2 %v2801_v59  ;;  %668 = vmatpush.msrb.mxu3 %v2801_v59 }
  0xcc   :  { %736 = vmatpush.msra.mxu0 %v2801_v59  ;;  %774 = vmatpush.msra.mxu1 %v2801_v59 }
  0xcd   :  { %612 = vmatpush.msrb.mxu2 %v2807_v61  ;;  %669 = vmatpush.msrb.mxu3 %v2807_v61 }
  0xce   :  { %737 = vmatpush.msra.mxu0 %v2807_v61  ;;  %775 = vmatpush.msra.mxu1 %v2807_v61 }
  0xcf   :  { %613 = vmatpush.msrb.mxu2 %v2812_v9  ;;  %670 = vmatpush.msrb.mxu3 %v2812_v9 }
  0xd0   :  { %738 = vmatpush.msra.mxu0 %v2812_v9  ;;  %776 = vmatpush.msra.mxu1 %v2812_v9 }
  0xd1   :  { %614 = vmatpush.msrb.mxu2 %v2815_v0  ;;  %671 = vmatpush.msrb.mxu3 %v2815_v0 }
  0xd2   :  { %739 = vmatpush.msra.mxu0 %v2815_v0  ;;  %777 = vmatpush.msra.mxu1 %v2815_v0 }
  0xd3   :  { %615 = vmatpush.msrb.mxu2 %v2823_v2  ;;  %672 = vmatpush.msrb.mxu3 %v2823_v2 }
  0xd4   :  { %740 = vmatpush.msra.mxu0 %v2823_v2  ;;  %778 = vmatpush.msra.mxu1 %v2823_v2 }
  0xd5   :  { %616 = vmatpush.msrb.mxu2 %v2833_v7  ;;  %673 = vmatpush.msrb.mxu3 %v2833_v7 }
  0xd6   :  { %741 = vmatpush.msra.mxu0 %v2833_v7  ;;  %779 = vmatpush.msra.mxu1 %v2833_v7 }
  0xd7   :  { %825 = vmatpush.msra.mxu2 %v2735_v37  ;;  %863 = vmatpush.msra.mxu3 %v2735_v37 }
  0xd9   :  { %826 = vmatpush.msra.mxu2 %v2738_v38  ;;  %864 = vmatpush.msra.mxu3 %v2738_v38 }
  0xdb   :  { %827 = vmatpush.msra.mxu2 %v2747_v57  ;;  %865 = vmatpush.msra.mxu3 %v2747_v57 }
  0xdd   :  { %828 = vmatpush.msra.mxu2 %v2753_v40  ;;  %866 = vmatpush.msra.mxu3 %v2753_v40 }
  0xdf   :  { %829 = vmatpush.msra.mxu2 %v2761_v43  ;;  %867 = vmatpush.msra.mxu3 %v2761_v43 }
  0xe1   :  { %830 = vmatpush.msra.mxu2 %v2766_v44  ;;  %868 = vmatpush.msra.mxu3 %v2766_v44 }
  0xe3   :  { %831 = vmatpush.msra.mxu2 %v2773_v25  ;;  %869 = vmatpush.msra.mxu3 %v2773_v25 }
  0xe5   :  { %832 = vmatpush.msra.mxu2 %v2781_v51  ;;  %870 = vmatpush.msra.mxu3 %v2781_v51 }
  0xe7   :  { %833 = vmatpush.msra.mxu2 %v2787_v52  ;;  %871 = vmatpush.msra.mxu3 %v2787_v52 }
  0xe9   :  { %834 = vmatpush.msra.mxu2 %v2795_v54  ;;  %872 = vmatpush.msra.mxu3 %v2795_v54 }
  0xeb   :  { %835 = vmatpush.msra.mxu2 %v2801_v59  ;;  %873 = vmatpush.msra.mxu3 %v2801_v59 }
  0xed   :  { %836 = vmatpush.msra.mxu2 %v2807_v61  ;;  %874 = vmatpush.msra.mxu3 %v2807_v61 }
  0xef   :  { %837 = vmatpush.msra.mxu2 %v2812_v9  ;;  %875 = vmatpush.msra.mxu3 %v2812_v9 }
  0xf0   :  { %v2793_v53 = vpop.f32.mrf.mxu1 }
  0xf1   :  { %838 = vmatpush.msra.mxu2 %v2815_v0  ;;  %876 = vmatpush.msra.mxu3 %v2815_v0 }
  0xf3   :  { %839 = vmatpush.msra.mxu2 %v2823_v2  ;;  %877 = vmatpush.msra.mxu3 %v2823_v2 }
  0xf5   :  { %840 = vmatpush.msra.mxu2 %v2833_v7  ;;  %878 = vmatpush.msra.mxu3 %v2833_v7 }
  0xf6   :  { %v2733_v36 = vpop.f32.mrf.mxu2 }
  0xf8   :  { %v573_v5 = vpop.f32.mrf.mxu1 }
  0xfe   :  { %v516_v45 = vpop.f32.mrf.mxu2 }
 0x107   :  { %v2727_v32 = vpop.f32.mrf.mxu0 }
 0x108   :  { %v496_v3 = vadd.f32 %v2723_v30, %v2727_v32 }
 0x10a   :  { %v2845_v12 = vadd.f32 %v2733_v36, %v496_v3 }
 0x10d   :  { %v2779_v49 = vpop.f32.mrf.mxu3 }
 0x10f   :  { %v2729_v34 = vpop.f32.mrf.mxu0 }
 0x110   :  { %v498_v1 = vadd.f32 %v2725_v31, %v2729_v34 }
 0x111   :  { %v576_v17 = vpop.f32.mrf.mxu1 }
 0x112   :  { %v2837_v8 = vadd.f32 %v516_v45, %v498_v1 }
 0x114   :  { %v581_v15 = vadd.f32 %v2837_v8, %v2845_v12 }
 0x115   :  { %v535_v18 = vpop.f32.mrf.mxu3 }
 0x117   :  { %v2745_v60 = vpop.f32.mrf.mxu0  ;;  %v519_v55 = vpop.f32.mrf.mxu2 }
 0x118   :  { %v501_v4 = vadd.f32 %v2731_v35, %v2745_v60 }
 0x119   :  { %v578_v36 = vpop.f32.mrf.mxu1 }
 0x11a   :  { %v2847_v14 = vadd.f32 %v519_v55, %v501_v4 }
 0x11c   :  { %v582_v56 = vadd.f32 %v581_v15, %v2847_v14 }
 0x11d   :  { %v538_v16 = vpop.f32.mrf.mxu3 }
 0x11f   :  { %v483_v48 = vpop.f32.mrf.mxu0  ;;  %v521_v11 = vpop.f32.mrf.mxu2 }
 0x120   :  { %v503_v10 = vadd.f32 %v2759_v42, %v483_v48 }
 0x122   :  { %v2855_v33 = vadd.f32 %v521_v11, %v503_v10 }
 0x124   :  { %v583_v20 = vadd.f32 %v582_v56, %v2855_v33 }
 0x125   :  { %v540_v30 = vpop.f32.mrf.mxu3 }
 0x126   :  { %v584_v26 = vrot.slane %v583_v20, 4 }
 0x127   :  { %v552_v58 = vpop.f32.mrf.mxu0 }
 0x128   :  { %v553_v22 = vadd.f32 %v552_v58, %v2779_v49  ;;  %v585_v32 = vadd.f32 %v584_v26, %v583_v20 }
 0x12a   :  { %v572_v28 = vadd.f32 %v2793_v53, %v553_v22  ;;  %v586_v45 = vrot.slane %v585_v32, 2 }
 0x12c   :  { %v587_v53 = vadd.f32 %v586_v45, %v585_v32 }
 0x12f   :  { %v554_v6 = vpop.f32.mrf.mxu0 }
 0x130   :  { %v555_v21 = vadd.f32 %v554_v6, %v535_v18  ;;  %v588_v18 = vrot.slane %v587_v53, 1 }
 0x132   :  { %v574_v27 = vadd.f32 %v573_v5, %v555_v21  ;;  %v589_v4 = vadd.f32 %v588_v18, %v587_v53 }
 0x134   :  { %v590_v34 = vadd.f32 %v574_v27, %v572_v28 }
 0x137   :  { %v557_v19 = vpop.f32.mrf.mxu0 }
 0x138   :  { %v558_v24 = vadd.f32 %v557_v19, %v538_v16 }
 0x13a   :  { %v577_v29 = vadd.f32 %v576_v17, %v558_v24 }
 0x13c   :  { %v591_v60 = vadd.f32 %v590_v34, %v577_v29 }
 0x13f   :  { %v559_v31 = vpop.f32.mrf.mxu0 }
 0x140   :  { %v560_v35 = vadd.f32 %v559_v31, %v540_v30 }
 0x142   :  { %v579_v42 = vadd.f32 %v578_v36, %v560_v35 }
 0x144   :  { %v592_v48 = vadd.f32 %v591_v60, %v579_v42 }
 0x146   :  { %v593_v49 = vrot.slane %v592_v48, 4 }
 0x148   :  { %v594_v55 = vadd.f32 %v593_v49, %v592_v48 }
 0x14a   :  { %v595_v58 = vrot.slane %v594_v55, 2 }
 0x14c   :  { %v596_v1 = vadd.f32 %v595_v58, %v594_v55 }
 0x14e   :  { %v597_v3 = vrot.slane %v596_v1, 1 }
 0x150   :  { %v598_v5 = vadd.f32 %v597_v3, %v596_v1 }
 0x152   :  { %v600_v6 = vsel %vm599_vm2, %v589_v4, %v598_v5 }
 0x153   :  { %617 = vmatmul.f32.vlgmr.msrb.gmra.mxu2 %v600_v6 }
 0x1d6   :  { %v618_v9 = vpop.f32.mrf.mxu2 }
 0x1d7   :  { %v621_v10 = vperm.slane %v618_v9, 0  ;;  %v626_v11 = vperm.slane %v618_v9, 1 }
 0x1d9   :  { %v622_v15 = vsub.f32 %v2845_v12, %v621_v10  ;;  %v623_v0 = vsub.f32 %v2837_v8, %v621_v10  ;;  %v624_v16 = vsub.f32 %v2847_v14, %v621_v10  ;;  %v2897_v56 = vsub.f32 %v572_v28, %v626_v11 }
 0x1da   :  { %v2899_v17 = vsub.f32 %v574_v27, %v626_v11  ;;  %v2901_v2 = vsub.f32 %v577_v29, %v626_v11  ;;  %v625_v19 = vsub.f32 %v2855_v33, %v621_v10  ;;  %v2904_v21 = vsub.f32 %v579_v42, %v626_v11  ;;  %v2918_v11 = vld [vmem:[%s3448_s4] sm:$0x3f] }
 0x1db   :  { %v631_v20 = vmul.f32 %v622_v15, %v622_v15  ;;  %v632_v7 = vmul.f32 %v623_v0, %v623_v0  ;;  %v644_v22 = vmul.f32 %v2897_v56, %v2897_v56  ;;  %v633_v12 = vmul.f32 %v624_v16, %v624_v16 }
 0x1dc   :  { %v645_v8 = vmul.f32 %v2899_v17, %v2899_v17  ;;  %v646_v24 = vmul.f32 %v2901_v2, %v2901_v2  ;;  %v634_v27 = vmul.f32 %v625_v19, %v625_v19  ;;  %v647_v33 = vmul.f32 %v2904_v21, %v2904_v21 }
 0x1dd   :  { %v635_v14 = vadd.f32 %v632_v7, %v631_v20 }
 0x1de   :  { %v648_v26 = vadd.f32 %v645_v8, %v644_v22 }
 0x1df   :  { %v636_v28 = vadd.f32 %v635_v14, %v633_v12  ;;  %v694_v12 = vperm.slane %v2918_v11, 1 }
 0x1e0   :  { %v649_v29 = vadd.f32 %v648_v26, %v646_v24 }
 0x1e1   :  { %v637_v30 = vadd.f32 %v636_v28, %v634_v27 }
 0x1e2   :  { %v650_v31 = vadd.f32 %v649_v29, %v647_v33 }
 0x1e3   :  { %v638_v32 = vrot.slane %v637_v30, 4 }
 0x1e4   :  { %v651_v34 = vrot.slane %v650_v31, 4 }
 0x1e5   :  { %v639_v35 = vadd.f32 %v638_v32, %v637_v30 }
 0x1e6   :  { %v652_v36 = vadd.f32 %v651_v34, %v650_v31 }
 0x1e7   :  { %v640_v60 = vrot.slane %v639_v35, 2 }
 0x1e8   :  { %v653_v42 = vrot.slane %v652_v36, 2 }
 0x1e9   :  { %v641_v45 = vadd.f32 %v640_v60, %v639_v35 }
 0x1ea   :  { %v654_v48 = vadd.f32 %v653_v42, %v652_v36 }
 0x1eb   :  { %v642_v49 = vrot.slane %v641_v45, 1 }
 0x1ec   :  { %v655_v53 = vrot.slane %v654_v48, 1 }
 0x1ed   :  { %v643_v55 = vadd.f32 %v642_v49, %v641_v45 }
 0x1ee   :  { %v656_v58 = vadd.f32 %v655_v53, %v654_v48 }
 0x1f0   :  { %v657_v18 = vsel %vm599_vm2, %v643_v55, %v656_v58 }
 0x1f1   :  { %674 = vmatmul.f32.vlgmr.msrb.gmra.mxu3 %v657_v18 }
 0x274   :  { %v675_v1 = vpop.f32.mrf.mxu3 }
 0x275   :  { %v676_v3 = vadd.f32 1e-05, %v675_v1 }
 0x277   :  { %2222 = vrsqrt.f32 %v676_v3  ;;  %vm684_vm4 = vweird.f32 %v676_v3 }
 0x27d   :  { %v2223_v4 = vpop.eup %2222 }
 0x27e   :  { %v679_v5 = vmul.f32 %v2223_v4, %v676_v3  ;;  %vm685_vm3 = vweird.f32 %v2223_v4 }
 0x27f   :  { %vm686_vm5 = vmor %vm684_vm4, %vm685_vm3 }
 0x280   :  { %v680_v6 = vmul.f32 %v2223_v4, %v679_v5 }
 0x282   :  { %v681_v9 = vmul.f32 0.5, %v680_v6 }
 0x284   :  { %v682_v10 = vsub.f32 1.5, %v681_v9 }
 0x286   :  { %v683_v20 = vmul.f32 %v2223_v4, %v682_v10 }
 0x288   :  { %v687_v7 = vsel %vm686_vm5, %v2223_v4, %v683_v20 }
 0x289   :  { %v688_v22 = vmul.f32 %v687_v7, %v2918_v11 }
 0x28b   :  { %v689_v8 = vperm.slane %v688_v22, 0 }
 0x28d   :  { %v690_v14 = vmul.f32 %v689_v8, %v622_v15  ;;  %v691_v24 = vmul.f32 %v689_v8, %v623_v0  ;;  %v692_v26 = vmul.f32 %v689_v8, %v624_v16  ;;  %v693_v27 = vmul.f32 %v689_v8, %v625_v19 }
 0x28f   :  { %v695_v28 = vadd.f32 %v694_v12, %v690_v14  ;;  %v696_v33 = vadd.f32 %v694_v12, %v691_v24  ;;  %v697_v29 = vadd.f32 %v694_v12, %v692_v26  ;;  %v698_v30 = vadd.f32 %v694_v12, %v693_v27 }
 0x291   :  { %v713_v31 = vmax.f32 %v695_v28, 0.0  ;;  %v714_v32 = vmax.f32 %v696_v33, 0.0  ;;  %v715_v34 = vmax.f32 %v697_v29, 0.0  ;;  %v716_v36 = vmax.f32 %v698_v30, 0.0 }
 0x293   :  { %v717_v35 = vadd.f32 %v714_v32, %v713_v31 }
 0x295   :  { %v718_v60 = vadd.f32 %v717_v35, %v715_v34 }
 0x297   :  { %v719_v42 = vadd.f32 %v718_v60, %v716_v36 }
 0x299   :  { %v720_v45 = vrot.slane %v719_v42, 4 }
 0x29b   :  { %v721_v48 = vadd.f32 %v720_v45, %v719_v42 }
 0x29d   :  { %v722_v49 = vrot.slane %v721_v48, 2 }
 0x29f   :  { %v723_v53 = vadd.f32 %v722_v49, %v721_v48  ;;  %v2925_v49 = vperm.slane %v2918_v11, 3 }
 0x2a1   :  { %v724_v55 = vrot.slane %v723_v53, 1 }
 0x2a3   :  { %v725_v15 = vadd.f32 %v724_v55, %v723_v53 }
 0x2a5   :  { %742 = vmatmul.f32.vlgmr.msra.gmra.mxu0 %v725_v15  ;;  %v708_v15 = vperm.slane %v2918_v11, 5 }
 0x322   :  { %v743_v0 = vpop.f32.mrf.mxu0 }
 0x323   :  { %v746_v16 = vperm.slane %v743_v0, 0 }
 0x325   :  { %v747_v19 = vsub.f32 %v713_v31, %v746_v16  ;;  %v748_v58 = vsub.f32 %v714_v32, %v746_v16  ;;  %v749_v18 = vsub.f32 %v715_v34, %v746_v16  ;;  %v750_v1 = vsub.f32 %v716_v36, %v746_v16 }
 0x326   :  { %v700_v31 = vrot.slane %v687_v7, 5 }
 0x327   :  { %v751_v3 = vmul.f32 %v747_v19, %v747_v19  ;;  %v752_v4 = vmul.f32 %v748_v58, %v748_v58  ;;  %v753_v5 = vmul.f32 %v749_v18, %v749_v18  ;;  %v754_v9 = vmul.f32 %v750_v1, %v750_v1 }
 0x328   :  { %v702_v35 = vmul.f32 %v700_v31, %v2918_v11 }
 0x329   :  { %v755_v6 = vadd.f32 %v752_v4, %v751_v3 }
 0x32a   :  { %v703_v45 = vperm.slane %v702_v35, 4 }
 0x32b   :  { %v756_v10 = vadd.f32 %v755_v6, %v753_v5 }
 0x32c   :  { %v704_v55 = vmul.f32 %v703_v45, %v2897_v56  ;;  %v705_v7 = vmul.f32 %v703_v45, %v2899_v17  ;;  %v706_v5 = vmul.f32 %v703_v45, %v2901_v2  ;;  %v707_v56 = vmul.f32 %v703_v45, %v2904_v21 }
 0x32d   :  { %v757_v20 = vadd.f32 %v756_v10, %v754_v9 }
 0x32e   :  { %v710_v17 = vadd.f32 %v708_v15, %v705_v7  ;;  %v712_v2 = vadd.f32 %v708_v15, %v707_v56  ;;  %v2044_v56 = vld [vmem:[%s3449_s5 + $0xf0] sm:$0xf] }
 0x32f   :  { %v758_v22 = vrot.slane %v757_v20, 4 }
 0x331   :  { %v759_v8 = vadd.f32 %v758_v22, %v757_v20  ;;  %v709_v22 = vadd.f32 %v708_v15, %v704_v55 }
 0x333   :  { %v760_v12 = vrot.slane %v759_v8, 2 }
 0x335   :  { %v761_v14 = vadd.f32 %v760_v12, %v759_v8 }
 0x337   :  { %v762_v24 = vrot.slane %v761_v14, 1 }
 0x339   :  { %v763_v26 = vadd.f32 %v762_v24, %v761_v14 }
 0x33b   :  { %780 = vmatmul.f32.vlgmr.msra.gmra.mxu1 %v763_v26 }
 0x3b8   :  { %v781_v27 = vpop.f32.mrf.mxu1 }
 0x3b9   :  { %v782_v28 = vadd.f32 1e-05, %v781_v27 }
 0x3bb   :  { %2224 = vrsqrt.f32 %v782_v28  ;;  %vm790_vm7 = vweird.f32 %v782_v28 }
 0x3c1   :  { %v2225_v33 = vpop.eup %2224 }
 0x3c2   :  { %v785_v29 = vmul.f32 %v2225_v33, %v782_v28  ;;  %vm791_vm6 = vweird.f32 %v2225_v33 }
 0x3c3   :  { %vm792_vm8 = vmor %vm790_vm7, %vm791_vm6 }
 0x3c4   :  { %v786_v30 = vmul.f32 %v2225_v33, %v785_v29 }
 0x3c6   :  { %v787_v32 = vmul.f32 0.5, %v786_v30 }
 0x3c8   :  { %v788_v34 = vsub.f32 1.5, %v787_v32 }
 0x3ca   :  { %v789_v36 = vmul.f32 %v2225_v33, %v788_v34 }
 0x3cc   :  { %v793_v60 = vsel %vm792_vm8, %v2225_v33, %v789_v36 }
 0x3cd   :  { %v795_v42 = vrot.slane %v793_v60, 6 }
 0x3cf   :  { %v797_v48 = vmul.f32 %v795_v42, %v2918_v11 }
 0x3d1   :  { %v798_v53 = vperm.slane %v797_v48, 2 }
 0x3d3   :  { %v799_v0 = vmul.f32 %v798_v53, %v747_v19  ;;  %v800_v16 = vmul.f32 %v798_v53, %v748_v58  ;;  %v801_v3 = vmul.f32 %v798_v53, %v749_v18  ;;  %v802_v4 = vmul.f32 %v798_v53, %v750_v1 }
 0x3d4   :  { %v711_v58 = vadd.f32 %v708_v15, %v706_v5 }
 0x3d5   :  { %v804_v6 = vadd.f32 %v2925_v49, %v799_v0  ;;  %v805_v9 = vadd.f32 %v2925_v49, %v800_v16  ;;  %v806_v10 = vadd.f32 %v2925_v49, %v801_v3  ;;  %v807_v20 = vadd.f32 %v2925_v49, %v802_v4 }
 0x3d7   :  { %v808_v8 = vmax.f32 %v804_v6, 0.0  ;;  %v809_v12 = vmax.f32 %v805_v9, 0.0  ;;  %v810_v19 = vmax.f32 %v806_v10, 0.0  ;;  %v811_v18 = vmax.f32 %v807_v20, 0.0 }
 0x3d9   :  { %v812_v1 = vadd.f32 %v808_v8, %v709_v22  ;;  %v813_v14 = vadd.f32 %v809_v12, %v710_v17  ;;  %v814_v24 = vadd.f32 %v810_v19, %v711_v58  ;;  %v815_v27 = vadd.f32 %v811_v18, %v712_v2  ;;  %v2195_v22 = vld [vmem:[%s3449_s5 + $0xf4] sm:$0xf0]  ;;  %v2036_v8 = vld [vmem:[%s3449_s5 + $0xe0] sm:$0xf]  ;;  %v2193_v12 = vld [vmem:[%s3449_s5 + $0xe4] sm:$0xf0] }
 0x3da   :  { %v2045_v17 = vor.u32 %v2195_v22, %v2044_v56  ;;  %v2037_v19 = vor.u32 %v2193_v12, %v2036_v8  ;;  %v1980_v58 = vld [vmem:[%s3449_s5 + $0x70] sm:$0xf]  ;;  %v2179_v18 = vld [vmem:[%s3449_s5 + $0x74] sm:$0xf0] }
 0x3db   :  { %v816_v26 = vadd.f32 %v813_v14, %v812_v1  ;;  %v2211_v2 = vld [vmem:[%s3449_s5 + $0x174] sm:$0xf0] }
 0x3dc   :  { %1290 = vmatpush.bf16.msrb.mxu1 %v2045_v17  ;;  %v2012_v17 = vld [vmem:[%s3449_s5 + $0xb0] sm:$0xf]  ;;  %v2187_v8 = vld [vmem:[%s3449_s5 + $0xb4] sm:$0xf0] }
 0x3dd   :  { %v817_v28 = vadd.f32 %v816_v26, %v814_v24  ;;  %v1982_v26 = vld [vmem:[%s3449_s5 + $0x78] sm:$0xf0]  ;;  %v2013_v12 = vor.u32 %v2187_v8, %v2012_v17  ;;  %v2181_v8 = vld [vmem:[%s3449_s5 + $0x84] sm:$0xf0] }
 0x3df   :  { %v818_v33 = vadd.f32 %v817_v28, %v815_v27 }
 0x3e0   :  { %1291 = vmatpush.bf16.msrb.mxu1 %v2037_v19  ;;  %v1956_v19 = vld [vmem:[%s3449_s5 + $0x40] sm:$0xf] }
 0x3e1   :  { %v819_v29 = vrot.slane %v818_v33, 4 }
 0x3e3   :  { %v820_v30 = vadd.f32 %v819_v29, %v818_v33  ;;  %v2028_v33 = vld [vmem:[%s3449_s5 + $0xd0] sm:$0xf]  ;;  %v2191_v29 = vld [vmem:[%s3449_s5 + $0xd4] sm:$0xf0] }
 0x3e5   :  { %v821_v31 = vrot.slane %v820_v30, 2 }
 0x3e7   :  { %v822_v32 = vadd.f32 %v821_v31, %v820_v30  ;;  %v2029_v30 = vor.u32 %v2191_v29, %v2028_v33  ;;  %v1972_v31 = vld [vmem:[%s3449_s5 + $0x60] sm:$0xf]  ;;  %v2185_v33 = vld [vmem:[%s3449_s5 + $0xa4] sm:$0xf0] }
 0x3e9   :  { %v823_v21 = vrot.slane %v822_v32, 1  ;;  %1292 = vmatpush.bf16.msrb.mxu1 %v2029_v30  ;;  %v1948_v30 = vld [vmem:[%s3449_s5 + $0x30] sm:$0xf] }
 0x3eb   :  { %v824_v34 = vadd.f32 %v823_v21, %v822_v32  ;;  %v2177_v32 = vld [vmem:[%s3449_s5 + $0x64] sm:$0xf0]  ;;  %v2100_v21 = vld [vmem:[%s3449_s5 + $0x160] sm:$0xf] }
 0x3ed   :  { %841 = vmatmul.f32.vlgmr.msra.gmra.mxu2 %v824_v34  ;;  %v1973_v34 = vor.u32 %v2177_v32, %v1972_v31  ;;  %v2171_v31 = vld [vmem:[%s3449_s5 + $0x34] sm:$0xf0]  ;;  %v2076_v32 = vld [vmem:[%s3449_s5 + $0x130] sm:$0xf] }
 0x470   :  { %v842_v35 = vpop.f32.mrf.mxu2 }
 0x471   :  { %v845_v36 = vperm.slane %v842_v35, 0  ;;  %v2209_v35 = vld [vmem:[%s3449_s5 + $0x164] sm:$0xf0] }
 0x473   :  { %v2936_v60 = vsub.f32 %v812_v1, %v845_v36  ;;  %v2938_v42 = vsub.f32 %v813_v14, %v845_v36  ;;  %v2940_v45 = vsub.f32 %v814_v24, %v845_v36  ;;  %v2942_v48 = vsub.f32 %v815_v27, %v845_v36  ;;  %v2108_v1 = vld [vmem:[%s3449_s5 + $0x170] sm:$0xf]  ;;  %v2178_v24 = vld [vmem:[%s3449_s5 + $0x74] sm:$0xf]  ;;  %v2176_v36 = vld [vmem:[%s3449_s5 + $0x64] sm:$0xf] }
 0x474   :  { %v1981_v14 = vor.u32 %v2179_v18, %v1980_v58  ;;  %v2109_v27 = vor.u32 %v2211_v2, %v2108_v1  ;;  %v1985_v28 = vor.u32 %v2178_v24, %v1982_v26  ;;  %v2173_v58 = vld [vmem:[%s3449_s5 + $0x44] sm:$0xf0]  ;;  %v2084_v18 = vld [vmem:[%s3449_s5 + $0x140] sm:$0xf]  ;;  %v2172_v2 = vld [vmem:[%s3449_s5 + $0x44] sm:$0xf] }
 0x475   :  { %v850_v53 = vmul.f32 %v2936_v60, %v2936_v60  ;;  %v851_v55 = vmul.f32 %v2938_v42, %v2938_v42  ;;  %v852_v7 = vmul.f32 %v2940_v45, %v2940_v45  ;;  %v853_v0 = vmul.f32 %v2942_v48, %v2942_v48  ;;  %v1958_v24 = vld [vmem:[%s3449_s5 + $0x48] sm:$0xf0] }
 0x476   :  { %1271 = vmatpush.bf16.msrb.mxu0 %v1981_v14  ;;  %1309 = vmatpush.bf16.msrb.mxu2 %v2109_v27  ;;  %v1957_v1 = vor.u32 %v2173_v58, %v1956_v19  ;;  %v2205_v14 = vld [vmem:[%s3449_s5 + $0x144] sm:$0xf0]  ;;  %v1961_v27 = vor.u32 %v2172_v2, %v1958_v24  ;;  %v2167_v19 = vld [vmem:[%s3449_s5 + $0x14] sm:$0xf0]  ;;  %v2166_v24 = vld [vmem:[%s3449_s5 + $0x14] sm:$0xf] }
 0x477   :  { %v854_v15 = vadd.f32 %v851_v55, %v850_v53  ;;  %1328 = vmatpush.bf16.msrb.mxu3 %v1985_v28  ;;  %v1974_v53 = vld [vmem:[%s3449_s5 + $0x68] sm:$0xf0]  ;;  %v2101_v55 = vor.u32 %v2209_v35, %v2100_v21  ;;  %v2085_v26 = vor.u32 %v2205_v14, %v2084_v18  ;;  %v2004_v28 = vld [vmem:[%s3449_s5 + $0xa0] sm:$0xf]  ;;  %v1949_v21 = vor.u32 %v2171_v31, %v1948_v30  ;;  %v2170_v35 = vld [vmem:[%s3449_s5 + $0x34] sm:$0xf] }
 0x478   :  { %v2005_v29 = vor.u32 %v2185_v33, %v2004_v28  ;;  %v2199_v14 = vld [vmem:[%s3449_s5 + $0x114] sm:$0xf0]  ;;  %v2210_v33 = vld [vmem:[%s3449_s5 + $0x174] sm:$0xf]  ;;  %v1924_v31 = vld [vmem:[%s3449_s5] sm:$0xf] }
 0x479   :  { %v855_v16 = vadd.f32 %v854_v15, %v852_v7  ;;  %v1977_v7 = vor.u32 %v2176_v36, %v1974_v53  ;;  %v2020_v15 = vld [vmem:[%s3449_s5 + $0xc0] sm:$0xf]  ;;  %v1950_v36 = vld [vmem:[%s3449_s5 + $0x38] sm:$0xf0] }
 0x47a   :  { %1272 = vmatpush.bf16.msrb.mxu0 %v1973_v34  ;;  %1310 = vmatpush.bf16.msrb.mxu2 %v2101_v55  ;;  %v2203_v34 = vld [vmem:[%s3449_s5 + $0x134] sm:$0xf0]  ;;  %v1953_v55 = vor.u32 %v2170_v35, %v1950_v36  ;;  %v2197_v35 = vld [vmem:[%s3449_s5 + $0x104] sm:$0xf0]  ;;  %v2164_v36 = vld [vmem:[%s3449_s5 + $0x4] sm:$0xf] }
 0x47b   :  { %v856_v3 = vadd.f32 %v855_v16, %v853_v0  ;;  %v2189_v0 = vld [vmem:[%s3449_s5 + $0xc4] sm:$0xf0]  ;;  %1329 = vmatpush.bf16.msrb.mxu3 %v1977_v7  ;;  %v2077_v53 = vor.u32 %v2203_v34, %v2076_v32  ;;  %v1996_v7 = vld [vmem:[%s3449_s5 + $0x90] sm:$0xf] }
 0x47c   :  { %v2021_v16 = vor.u32 %v2189_v0, %v2020_v15  ;;  %v2183_v15 = vld [vmem:[%s3449_s5 + $0x94] sm:$0xf0]  ;;  %v1940_v0 = vld [vmem:[%s3449_s5 + $0x20] sm:$0xf]  ;;  %v2165_v32 = vld [vmem:[%s3449_s5 + $0x4] sm:$0xf0] }
 0x47d   :  { %v857_v4 = vrot.slane %v856_v3, 4  ;;  %v1925_v34 = vor.u32 %v2165_v32, %v1924_v31 }
 0x47e   :  { %1293 = vmatpush.bf16.msrb.mxu1 %v2021_v16  ;;  %v1997_v16 = vor.u32 %v2183_v15, %v1996_v7 }
 0x47f   :  { %v858_v5 = vadd.f32 %v857_v4, %v856_v3  ;;  %v1964_v3 = vld [vmem:[%s3449_s5 + $0x50] sm:$0xf]  ;;  %v2175_v4 = vld [vmem:[%s3449_s5 + $0x54] sm:$0xf0] }
 0x481   :  { %v859_v6 = vrot.slane %v858_v5, 2 }
 0x482   :  { %1294 = vmatpush.bf16.msrb.mxu1 %v2013_v12  ;;  %v1932_v12 = vld [vmem:[%s3449_s5 + $0x10] sm:$0xf] }
 0x483   :  { %v860_v9 = vadd.f32 %v859_v6, %v858_v5  ;;  %v2092_v5 = vld [vmem:[%s3449_s5 + $0x150] sm:$0xf]  ;;  %v1965_v6 = vor.u32 %v2175_v4, %v1964_v3  ;;  %v2169_v3 = vld [vmem:[%s3449_s5 + $0x24] sm:$0xf0]  ;;  %v2068_v4 = vld [vmem:[%s3449_s5 + $0x120] sm:$0xf]  ;;  %v1933_v2 = vor.u32 %v2167_v19, %v1932_v12 }
 0x484   :  { %v2190_v12 = vld [vmem:[%s3449_s5 + $0xd4] sm:$0xf] }
 0x485   :  { %v861_v10 = vrot.slane %v860_v9, 1  ;;  %1273 = vmatpush.bf16.msrb.mxu0 %v1965_v6  ;;  %v1941_v6 = vor.u32 %v2169_v3, %v1940_v0  ;;  %v2102_v3 = vld [vmem:[%s3449_s5 + $0x168] sm:$0xf0] }
 0x486   :  { %1295 = vmatpush.bf16.msrb.mxu1 %v2005_v29  ;;  %v2110_v29 = vld [vmem:[%s3449_s5 + $0x178] sm:$0xf0] }
 0x487   :  { %v862_v20 = vadd.f32 %v861_v10, %v860_v9  ;;  %v2207_v9 = vld [vmem:[%s3449_s5 + $0x154] sm:$0xf0]  ;;  %v2174_v10 = vld [vmem:[%s3449_s5 + $0x54] sm:$0xf]  ;;  %v2113_v30 = vor.u32 %v2210_v33, %v2110_v29 }
 0x488   :  { %v2093_v56 = vor.u32 %v2207_v9, %v2092_v5  ;;  %v2201_v5 = vld [vmem:[%s3449_s5 + $0x124] sm:$0xf0]  ;;  %v2202_v33 = vld [vmem:[%s3449_s5 + $0x134] sm:$0xf] }
 0x489   :  { %879 = vmatmul.f32.vlgmr.msra.gmra.mxu3 %v862_v20  ;;  %v1966_v20 = vld [vmem:[%s3449_s5 + $0x58] sm:$0xf0]  ;;  %1274 = vmatpush.bf16.msrb.mxu0 %v1957_v1  ;;  %v2069_v9 = vor.u32 %v2201_v5, %v2068_v4  ;;  %v2060_v1 = vld [vmem:[%s3449_s5 + $0x110] sm:$0xf]  ;;  %v2194_v5 = vld [vmem:[%s3449_s5 + $0xf4] sm:$0xf] }
 0x48a   :  { %v1969_v22 = vor.u32 %v2174_v10, %v1966_v20  ;;  %1311 = vmatpush.bf16.msrb.mxu2 %v2093_v56  ;;  %v2168_v10 = vld [vmem:[%s3449_s5 + $0x24] sm:$0xf]  ;;  %v1942_v20 = vld [vmem:[%s3449_s5 + $0x28] sm:$0xf0]  ;;  %v1988_v56 = vld [vmem:[%s3449_s5 + $0x80] sm:$0xf]  ;;  %1296 = vmatpush.bf16.msrb.mxu1 %v1997_v16 }
 0x48b   :  { %v1945_v17 = vor.u32 %v2168_v10, %v1942_v20  ;;  %v1989_v18 = vor.u32 %v2181_v8, %v1988_v56  ;;  %v2208_v16 = vld [vmem:[%s3449_s5 + $0x164] sm:$0xf]  ;;  %v2206_v8 = vld [vmem:[%s3449_s5 + $0x154] sm:$0xf] }
 0x48c   :  { %1330 = vmatpush.bf16.msrb.mxu3 %v1969_v22  ;;  %v2192_v56 = vld [vmem:[%s3449_s5 + $0xe4] sm:$0xf] }
 0x48d   :  { %1275 = vmatpush.bf16.msrb.mxu0 %v1949_v21  ;;  %v2052_v21 = vld [vmem:[%s3449_s5 + $0x100] sm:$0xf] }
 0x48e   :  { %1312 = vmatpush.bf16.msrb.mxu2 %v2085_v26  ;;  %v1934_v26 = vld [vmem:[%s3449_s5 + $0x18] sm:$0xf0]  ;;  %1297 = vmatpush.bf16.msrb.mxu1 %v1989_v18  ;;  %v2053_v7 = vor.u32 %v2197_v35, %v2052_v21 }
 0x48f   :  { %v1937_v28 = vor.u32 %v2166_v24, %v1934_v26 }
 0x490   :  { %1331 = vmatpush.bf16.msrb.mxu3 %v1961_v27  ;;  %v2061_v27 = vor.u32 %v2199_v14, %v2060_v1  ;;  %v2030_v1 = vld [vmem:[%s3449_s5 + $0xd8] sm:$0xf0]  ;;  %v2204_v14 = vld [vmem:[%s3449_s5 + $0x144] sm:$0xf] }
 0x491   :  { %1276 = vmatpush.bf16.msrb.mxu0 %v1941_v6  ;;  %v2046_v6 = vld [vmem:[%s3449_s5 + $0xf8] sm:$0xf0]  ;;  %v2033_v26 = vor.u32 %v2190_v12, %v2030_v1 }
 0x492   :  { %1313 = vmatpush.bf16.msrb.mxu2 %v2077_v53  ;;  %v1926_v53 = vld [vmem:[%s3449_s5 + $0x8] sm:$0xf0]  ;;  %1366 = vmatpush.bf16.msra.mxu1 %v2113_v30  ;;  %v2049_v10 = vor.u32 %v2194_v5, %v2046_v6  ;;  %v3283_v1 = vld [vmem:[#allocation2 + $0x18] sm:$0xff] }
 0x493   :  { %v1929_v15 = vor.u32 %v2164_v36, %v1926_v53 }
 0x494   :  { %1332 = vmatpush.bf16.msrb.mxu3 %v1953_v55 }
 0x495   :  { %1277 = vmatpush.bf16.msrb.mxu0 %v1933_v2  ;;  %v2086_v2 = vld [vmem:[%s3449_s5 + $0x148] sm:$0xf0] }
 0x496   :  { %1314 = vmatpush.bf16.msrb.mxu2 %v2069_v9  ;;  %v2105_v9 = vor.u32 %v2208_v16, %v2102_v3  ;;  %v2089_v24 = vor.u32 %v2204_v14, %v2086_v2 }
 0x498   :  { %1333 = vmatpush.bf16.msrb.mxu3 %v1945_v17  ;;  %1367 = vmatpush.bf16.msra.mxu1 %v2105_v9 }
 0x499   :  { %1278 = vmatpush.bf16.msrb.mxu0 %v1925_v34 }
 0x49a   :  { %1315 = vmatpush.bf16.msrb.mxu2 %v2061_v27 }
 0x49c   :  { %1334 = vmatpush.bf16.msrb.mxu3 %v1937_v28 }
 0x49d   :  { %1347 = vmatpush.bf16.msra.mxu0 %v2049_v10 }
 0x49e   :  { %1316 = vmatpush.bf16.msrb.mxu2 %v2053_v7 }
 0x4a0   :  { %1335 = vmatpush.bf16.msrb.mxu3 %v1929_v15 }
 0x4a2   :  { %1404 = vmatpush.msra.mxu2 %v2735_v37 }
 0x4a4   :  { %1461 = vmatpush.msra.mxu3 %v2735_v37  ;;  %1405 = vmatpush.msra.mxu2 %v2738_v38  ;;  %v2094_v37 = vld [vmem:[%s3449_s5 + $0x158] sm:$0xf0] }
 0x4a5   :  { %v2097_v18 = vor.u32 %v2206_v8, %v2094_v37 }
 0x4a6   :  { %1462 = vmatpush.msra.mxu3 %v2738_v38  ;;  %1406 = vmatpush.msra.mxu2 %v2747_v57 }
 0x4a7   :  { %1368 = vmatpush.bf16.msra.mxu1 %v2097_v18 }
 0x4a8   :  { %1463 = vmatpush.msra.mxu3 %v2747_v57  ;;  %1407 = vmatpush.msra.mxu2 %v2753_v40 }
 0x4aa   :  { %1464 = vmatpush.msra.mxu3 %v2753_v40  ;;  %1408 = vmatpush.msra.mxu2 %v2761_v43  ;;  %v2022_v40 = vld [vmem:[%s3449_s5 + $0xc8] sm:$0xf0] }
 0x4ab   :  { %1369 = vmatpush.bf16.msra.mxu1 %v2089_v24 }
 0x4ac   :  { %1465 = vmatpush.msra.mxu3 %v2761_v43  ;;  %1409 = vmatpush.msra.mxu2 %v2766_v44 }
 0x4ae   :  { %1466 = vmatpush.msra.mxu3 %v2766_v44  ;;  %1410 = vmatpush.msra.mxu2 %v2773_v25 }
 0x4b0   :  { %1467 = vmatpush.msra.mxu3 %v2773_v25  ;;  %1411 = vmatpush.msra.mxu2 %v2781_v51 }
 0x4b2   :  { %1412 = vmatpush.msra.mxu2 %v2787_v52  ;;  %1468 = vmatpush.msra.mxu3 %v2781_v51 }
 0x4b4   :  { %1413 = vmatpush.msra.mxu2 %v2795_v54  ;;  %1469 = vmatpush.msra.mxu3 %v2787_v52 }
 0x4b6   :  { %1414 = vmatpush.msra.mxu2 %v2801_v59 }
 0x4b8   :  { %1415 = vmatpush.msra.mxu2 %v2807_v61 }
 0x4ba   :  { %1416 = vmatpush.msra.mxu2 %v3283_v1 }
 0x50c   :  { %v880_v22 = vpop.f32.mrf.mxu3 }
 0x50d   :  { %v3114_v58 = vadd.f32 1e-05, %v880_v22  ;;  %v2038_v22 = vld [vmem:[%s3449_s5 + $0xe8] sm:$0xf0] }
 0x50e   :  { %v2041_v17 = vor.u32 %v2192_v56, %v2038_v22  ;;  %v3268_v56 = vld [vmem:[#allocation2 + $0x28] sm:$0xff] }
 0x50f   :  { %2226 = vrsqrt.f32 %v3114_v58  ;;  %vm889_vm10 = vweird.f32 %v3114_v58 }
 0x510   :  { %1348 = vmatpush.bf16.msra.mxu0 %v2041_v17 }
 0x514   :  { %1349 = vmatpush.bf16.msra.mxu0 %v2033_v26  ;;  %v3291_v26 = vld [vmem:[#allocation2 + $0x10] sm:$0xff] }
 0x515   :  { %v2227_v55 = vpop.eup %2226  ;;  %1417 = vmatpush.msra.mxu2 %v3291_v26 }
 0x516   :  { %v884_v0 = vmul.f32 %v2227_v55, %v3114_v58  ;;  %vm890_vm9 = vweird.f32 %v2227_v55  ;;  %v2188_v58 = vld [vmem:[%s3449_s5 + $0xc4] sm:$0xf] }
 0x517   :  { %vm891_vm11 = vmor %vm889_vm10, %vm890_vm9  ;;  %v2025_v43 = vor.u32 %v2188_v58, %v2022_v40  ;;  %v2006_v40 = vld [vmem:[%s3449_s5 + $0xa8] sm:$0xf0] }
 0x518   :  { %v885_v4 = vmul.f32 %v2227_v55, %v884_v0 }
 0x519   :  { %1350 = vmatpush.bf16.msra.mxu0 %v2025_v43  ;;  %v2062_v43 = vld [vmem:[%s3449_s5 + $0x118] sm:$0xf0] }
 0x51a   :  { %v886_v20 = vmul.f32 0.5, %v885_v4  ;;  %v3258_v4 = vld [vmem:[#allocation2 + $0x30] sm:$0xff] }
 0x51b   :  { %1470 = vmatpush.msra.mxu3 %v3258_v4 }
 0x51c   :  { %v887_v19 = vsub.f32 1.5, %v886_v20 }
 0x51d   :  { %1471 = vmatpush.msra.mxu3 %v3268_v56 }
 0x51e   :  { %v888_v38 = vmul.f32 %v2227_v55, %v887_v19 }
 0x520   :  { %v892_v27 = vsel %vm891_vm11, %v2227_v55, %v888_v38  ;;  %v2070_v55 = vld [vmem:[%s3449_s5 + $0x128] sm:$0xf0] }
 0x521   :  { %v894_v28 = vrot.slane %v892_v27, 6  ;;  %v2184_v27 = vld [vmem:[%s3449_s5 + $0xa4] sm:$0xf] }
 0x523   :  { %v896_v57 = vmul.f32 %v894_v28, %v2918_v11  ;;  %v2078_v11 = vld [vmem:[%s3449_s5 + $0x138] sm:$0xf0] }
 0x524   :  { %v2081_v30 = vor.u32 %v2202_v33, %v2078_v11  ;;  %v2198_v33 = vld [vmem:[%s3449_s5 + $0x114] sm:$0xf]  ;;  %v3308_v11 = vld [vmem:[#allocation2 + $0x8] sm:$0xff] }
 0x525   :  { %v897_v29 = vperm.slane %v896_v57, 2  ;;  %1418 = vmatpush.msra.mxu2 %v3308_v11 }
 0x526   :  { %1370 = vmatpush.bf16.msra.mxu1 %v2081_v30 }
 0x527   :  { %v900_v31 = vmul.f32 %v897_v29, %v2940_v45  ;;  %v901_v32 = vmul.f32 %v897_v29, %v2942_v48  ;;  %v898_v21 = vmul.f32 %v897_v29, %v2936_v60  ;;  %v899_v44 = vmul.f32 %v897_v29, %v2938_v42  ;;  %v2186_v60 = vld [vmem:[%s3449_s5 + $0xb4] sm:$0xf]  ;;  %v2014_v42 = vld [vmem:[%s3449_s5 + $0xb8] sm:$0xf0]  ;;  %v2200_v45 = vld [vmem:[%s3449_s5 + $0x124] sm:$0xf] }
 0x528   :  { %v2017_v7 = vor.u32 %v2186_v60, %v2014_v42  ;;  %v2073_v15 = vor.u32 %v2200_v45, %v2070_v55  ;;  %v2065_v60 = vor.u32 %v2198_v33, %v2062_v43  ;;  %v2196_v42 = vld [vmem:[%s3449_s5 + $0x104] sm:$0xf]  ;;  %v2054_v45 = vld [vmem:[%s3449_s5 + $0x108] sm:$0xf0] }
 0x529   :  { %v902_v34 = vadd.f32 %v898_v21, %v2925_v49  ;;  %v903_v35 = vadd.f32 %v899_v44, %v2925_v49  ;;  %v905_v25 = vadd.f32 %v901_v32, %v2925_v49  ;;  %v904_v36 = vadd.f32 %v900_v31, %v2925_v49  ;;  %v2182_v21 = vld [vmem:[%s3449_s5 + $0x94] sm:$0xf]  ;;  %v1998_v44 = vld [vmem:[%s3449_s5 + $0x98] sm:$0xf0] }
 0x52a   :  { %1351 = vmatpush.bf16.msra.mxu0 %v2017_v7  ;;  %1371 = vmatpush.bf16.msra.mxu1 %v2073_v15  ;;  %v2001_v7 = vor.u32 %v2182_v21, %v1998_v44 }
 0x52b   :  { %v3239_v48 = vmax.f32 %v902_v34, 0.0  ;;  %v3241_v53 = vmax.f32 %v903_v35, 0.0  ;;  %v3243_v49 = vmax.f32 %v905_v25, 0.0  ;;  %v3245_v51 = vmax.f32 %v904_v36, 0.0  ;;  %v3324_v34 = vld [vmem:[#allocation2] sm:$0xff] }
 0x52c   :  { %1419 = vmatpush.msra.mxu2 %v3324_v34  ;;  %v2009_v36 = vor.u32 %v2184_v27, %v2006_v40 }
 0x52d   :  { %v910_v54 = vpack.c.bf16 %v3239_v48, %v3239_v48  ;;  %v911_v0 = vpack.c.bf16 %v3241_v53, %v3241_v53  ;;  %v915_v16 = vrot.slane %v3239_v48, 7  ;;  %v916_v3 = vrot.slane %v3241_v53, 7 }
 0x52e   :  { %v918_v52 = vrot.slane %v3243_v49, 7  ;;  %v931_v5 = vrot.slane %v3239_v48, 1  ;;  %v932_v59 = vrot.slane %v3241_v53, 1  ;;  %v933_v6 = vrot.slane %v3245_v51, 1  ;;  %1352 = vmatpush.bf16.msra.mxu0 %v2009_v36  ;;  %1372 = vmatpush.bf16.msra.mxu1 %v2065_v60 }
 0x52f   :  { %v963_v9 = vunpack.c.l.b16 %v910_v54  ;;  %v964_v10 = vunpack.c.l.b16 %v911_v0  ;;  %v921_v20 = vsel %vm77_vm1, %v915_v16, %v916_v3  ;;  %v912_v48 = vpack.c.bf16 %v3245_v51, %v3245_v51 }
 0x530   :  { %v922_v22 = vsel %vm77_vm1, %v918_v52, %v915_v16  ;;  %v924_v17 = vmul.f32 %v921_v20, %v2696_v62  ;;  %v936_v8 = vsel %vm114_vm0, %v932_v59, %v933_v6  ;;  %v937_v37 = vsel %vm114_vm0, %v931_v5, %v932_v59  ;;  %v3286_v62 = vld [vmem:[#allocation2 + $0x20] sm:$0xff] }
 0x531   :  { %v3278_v12 = vpack.c.b16 %v964_v10, %v963_v9  ;;  %v923_v19 = vmul.f32 %v922_v22, %v2667_v46  ;;  %v939_v61 = vmul.f32 %v937_v37, %v2572_v50  ;;  %v940_v18 = vmul.f32 %v936_v8, %v2624_v13  ;;  %1472 = vmatpush.msra.mxu3 %v3286_v62  ;;  %v2244_v8 = vld [vmem:[#allocation2 + $0x60] sm:$0xff]  ;;  %v2245_v37 = vld [vmem:[#allocation2 + $0x58] sm:$0xff] }
 0x532   :  { %v928_v14 = vpack.c.bf16 %v924_v17, %v924_v17  ;;  %v917_v46 = vrot.slane %v3245_v51, 7  ;;  %v934_v13 = vrot.slane %v3243_v49, 1  ;;  %v913_v23 = vpack.c.bf16 %v3243_v49, %v3243_v49  ;;  %v2180_v51 = vld [vmem:[%s3449_s5 + $0x84] sm:$0xf]  ;;  %v1990_v49 = vld [vmem:[%s3449_s5 + $0x88] sm:$0xf0]  ;;  %1353 = vmatpush.bf16.msra.mxu0 %v2001_v7 }
 0x533   :  { %1298 = vmatmul.bf16.vlgmr.msrb.gmra.mxu1 %v3278_v12  ;;  %v927_v2 = vpack.c.bf16 %v923_v19, %v923_v19  ;;  %v943_v38 = vpack.c.bf16 %v939_v61, %v939_v61  ;;  %v944_v24 = vpack.c.bf16 %v940_v18, %v940_v18  ;;  %1473 = vmatpush.msra.mxu3 %v3283_v1  ;;  %v2246_v18 = vld [vmem:[#allocation2 + $0x50] sm:$0xff] }
 0x534   :  { %v952_v50 = vunpack.c.l.b16 %v928_v14  ;;  %v919_v31 = vsel %vm77_vm1, %v917_v46, %v918_v52  ;;  %v920_v32 = vsel %vm77_vm1, %v916_v3, %v917_v46  ;;  %v935_v35 = vsel %vm114_vm0, %v933_v6, %v934_v13  ;;  %v2242_v3 = vld [vmem:[#allocation2 + $0x70] sm:$0xff]  ;;  %v2243_v6 = vld [vmem:[#allocation2 + $0x68] sm:$0xff] }
 0x535   :  { %v951_v28 = vunpack.c.l.b16 %v927_v2  ;;  %v975_v57 = vunpack.c.l.b16 %v943_v38  ;;  %v976_v58 = vunpack.c.l.b16 %v944_v24  ;;  %1474 = vmatpush.msra.mxu3 %v3291_v26  ;;  %v938_v25 = vsel %vm114_vm0, %v934_v13, %v931_v5  ;;  %v2247_v14 = vld [vmem:[#allocation2 + $0x48] sm:$0xff]  ;;  %v2248_v2 = vld [vmem:[#allocation2 + $0x40] sm:$0xff]  ;;  %v2249_v38 = vld [vmem:[#allocation2 + $0x38] sm:$0xff] }
 0x536   :  { %v925_v53 = vmul.f32 %v920_v32, %v2669_v47  ;;  %v926_v55 = vmul.f32 %v919_v31, %v2698_v63  ;;  %v941_v15 = vmul.f32 %v935_v35, %v2715_v41  ;;  %v942_v54 = vmul.f32 %v938_v25, %v2713_v39  ;;  %v2241_v47 = vld [vmem:[#allocation2 + $0x78] sm:$0xff] }
 0x537   :  { %v955_v29 = vpack.c.b16 %v952_v50, %v951_v28  ;;  %v3312_v30 = vpack.c.b16 %v976_v58, %v975_v57  ;;  %1475 = vmatpush.msra.mxu3 %v3308_v11  ;;  %v2057_v0 = vor.u32 %v2196_v42, %v2054_v45  ;;  %v965_v63 = vunpack.c.l.b16 %v912_v48 }
 0x538   :  { %v966_v16 = vunpack.c.l.b16 %v913_v23  ;;  %v929_v41 = vpack.c.bf16 %v925_v53, %v925_v53  ;;  %v1993_v39 = vor.u32 %v2180_v51, %v1990_v49  ;;  %v930_v52 = vpack.c.bf16 %v926_v55, %v926_v55 }
 0x539   :  { %1279 = vmatmul.bf16.vlgmr.msrb.gmra.mxu0 %v955_v29  ;;  %1317 = vmatmul.bf16.vlgmr.msrb.gmra.mxu2 %v3312_v30  ;;  %v945_v5 = vpack.c.bf16 %v941_v15, %v941_v15  ;;  %v946_v59 = vpack.c.bf16 %v942_v54, %v942_v54 }
 0x53a   :  { %1336 = vmatmul.bf16.vlgmr.msrb.gmra.mxu3 %v955_v29  ;;  %1628 = vmatpush.msrb.mxu2 %v2241_v47  ;;  %v3354_v9 = vpack.c.b16 %v966_v16, %v965_v63  ;;  %v953_v10 = vunpack.c.l.b16 %v929_v41  ;;  %v954_v20 = vunpack.c.l.b16 %v930_v52 }
 0x53b   :  { %1476 = vmatpush.msra.mxu3 %v3324_v34  ;;  %1373 = vmatpush.bf16.msra.mxu1 %v2057_v0  ;;  %v977_v22 = vunpack.c.l.b16 %v945_v5  ;;  %v978_v17 = vunpack.c.l.b16 %v946_v59 }
 0x53c   :  { %1629 = vmatpush.msrb.mxu2 %v2242_v3  ;;  %1354 = vmatpush.bf16.msra.mxu0 %v1993_v39  ;;  %v956_v19 = vpack.c.b16 %v954_v20, %v953_v10 }
 0x53d   :  { %1666 = vmatpush.msrb.mxu3 %v2241_v47  ;;  %v980_v61 = vpack.c.b16 %v978_v17, %v977_v22 }
 0x53e   :  { %1630 = vmatpush.msrb.mxu2 %v2243_v6 }
 0x53f   :  { %1667 = vmatpush.msrb.mxu3 %v2242_v3  ;;  %1567 = vmatpush.msrb.mxu1 %v2241_v47 }
 0x540   :  { %1529 = vmatpush.msrb.mxu0 %v2241_v47  ;;  %1631 = vmatpush.msrb.mxu2 %v2244_v8 }
 0x541   :  { %1668 = vmatpush.msrb.mxu3 %v2243_v6  ;;  %1568 = vmatpush.msrb.mxu1 %v2242_v3 }
 0x542   :  { %1530 = vmatpush.msrb.mxu0 %v2242_v3  ;;  %1632 = vmatpush.msrb.mxu2 %v2245_v37 }
 0x543   :  { %1303 = vmatmul.bf16.gmra.mxu1 %v3354_v9  ;;  %1669 = vmatpush.msrb.mxu3 %v2244_v8 }
 0x544   :  { %1569 = vmatpush.msrb.mxu1 %v2243_v6  ;;  %1531 = vmatpush.msrb.mxu0 %v2243_v6 }
 0x545   :  { %1670 = vmatpush.msrb.mxu3 %v2245_v37  ;;  %1633 = vmatpush.msrb.mxu2 %v2246_v18 }
 0x546   :  { %1570 = vmatpush.msrb.mxu1 %v2244_v8  ;;  %1532 = vmatpush.msrb.mxu0 %v2244_v8 }
 0x547   :  { %1634 = vmatpush.msrb.mxu2 %v2247_v14  ;;  %1671 = vmatpush.msrb.mxu3 %v2246_v18 }
 0x548   :  { %1571 = vmatpush.msrb.mxu1 %v2245_v37  ;;  %1533 = vmatpush.msrb.mxu0 %v2245_v37 }
 0x549   :  { %1284 = vmatmul.bf16.gmra.mxu0 %v956_v19  ;;  %1322 = vmatmul.bf16.gmra.mxu2 %v980_v61 }
 0x54a   :  { %1341 = vmatmul.bf16.gmra.mxu3 %v956_v19  ;;  %1572 = vmatpush.msrb.mxu1 %v2246_v18 }
 0x54b   :  { %1635 = vmatpush.msrb.mxu2 %v2248_v2  ;;  %1534 = vmatpush.msrb.mxu0 %v2246_v18 }
 0x54c   :  { %1573 = vmatpush.msrb.mxu1 %v2247_v14  ;;  %1672 = vmatpush.msrb.mxu3 %v2247_v14 }
 0x54d   :  { %1636 = vmatpush.msrb.mxu2 %v2249_v38  ;;  %1535 = vmatpush.msrb.mxu0 %v2247_v14 }
 0x54e   :  { %1574 = vmatpush.msrb.mxu1 %v2248_v2  ;;  %1673 = vmatpush.msrb.mxu3 %v2248_v2 }
 0x54f   :  { %1637 = vmatpush.msrb.mxu2 %v3258_v4  ;;  %1536 = vmatpush.msrb.mxu0 %v2248_v2 }
 0x550   :  { %1575 = vmatpush.msrb.mxu1 %v2249_v38  ;;  %1674 = vmatpush.msrb.mxu3 %v2249_v38 }
 0x551   :  { %1638 = vmatpush.msrb.mxu2 %v3268_v56  ;;  %1537 = vmatpush.msrb.mxu0 %v2249_v38 }
 0x552   :  { %1576 = vmatpush.msrb.mxu1 %v3258_v4  ;;  %1675 = vmatpush.msrb.mxu3 %v3258_v4 }
 0x553   :  { %1374 = vmatmul.bf16.vlgmr.msra.gmra.mxu1 %v3312_v30  ;;  %1639 = vmatpush.msrb.mxu2 %v3286_v62 }
 0x554   :  { %1538 = vmatpush.msrb.mxu0 %v3258_v4  ;;  %1577 = vmatpush.msrb.mxu1 %v3268_v56 }
 0x555   :  { %1640 = vmatpush.msrb.mxu2 %v3283_v1  ;;  %1676 = vmatpush.msrb.mxu3 %v3268_v56 }
 0x556   :  { %1539 = vmatpush.msrb.mxu0 %v3268_v56  ;;  %1578 = vmatpush.msrb.mxu1 %v3286_v62 }
 0x557   :  { %1641 = vmatpush.msrb.mxu2 %v3291_v26  ;;  %1677 = vmatpush.msrb.mxu3 %v3286_v62 }
 0x558   :  { %1540 = vmatpush.msrb.mxu0 %v3286_v62  ;;  %1579 = vmatpush.msrb.mxu1 %v3283_v1 }
 0x559   :  { %1355 = vmatmul.bf16.vlgmr.msra.gmra.mxu0 %v3278_v12  ;;  %1642 = vmatpush.msrb.mxu2 %v3308_v11 }
 0x55a   :  { %1541 = vmatpush.msrb.mxu0 %v3283_v1  ;;  %1580 = vmatpush.msrb.mxu1 %v3291_v26 }
 0x55b   :  { %1643 = vmatpush.msrb.mxu2 %v3324_v34  ;;  %1678 = vmatpush.msrb.mxu3 %v3283_v1 }
 0x55c   :  { %1542 = vmatpush.msrb.mxu0 %v3291_v26  ;;  %1581 = vmatpush.msrb.mxu1 %v3308_v11 }
 0x55d   :  { %1679 = vmatpush.msrb.mxu3 %v3291_v26 }
 0x55e   :  { %1543 = vmatpush.msrb.mxu0 %v3308_v11  ;;  %1582 = vmatpush.msrb.mxu1 %v3324_v34 }
 0x55f   :  { %1680 = vmatpush.msrb.mxu3 %v3308_v11 }
 0x560   :  { %1544 = vmatpush.msrb.mxu0 %v3324_v34 }
 0x561   :  { %1681 = vmatpush.msrb.mxu3 %v3324_v34 }
 0x563   :  { %1379 = vmatmul.bf16.gmra.mxu1 %v980_v61 }
 0x569   :  { %1360 = vmatmul.bf16.gmra.mxu0 %v3354_v9 }
 0x5b0   :  { %v1299_v4 = vpop.f32.mrf.mxu1 }
 0x5b6   :  { %v1280_v56 = vpop.f32.mrf.mxu0 }
 0x5b7   :  { %v1300_v29 = vadd.f32 %v1299_v4, %v1280_v56 }
 0x5b8   :  { %v1301_v12 = vpop.f32.mrf.mxu1 }
 0x5bc   :  { %v1318_v24 = vpop.f32.mrf.mxu2 }
 0x5bd   :  { %v1337_v27 = vpop.f32.mrf.mxu3  ;;  %v1319_v21 = vadd.f32 %v1318_v24, %v1300_v29 }
 0x5be   :  { %v1282_v1 = vpop.f32.mrf.mxu0 }
 0x5bf   :  { %v1302_v43 = vadd.f32 %v1301_v12, %v1282_v1 }
 0x5c0   :  { %v1304_v62 = vpop.f32.mrf.mxu1 }
 0x5c4   :  { %v1320_v50 = vpop.f32.mrf.mxu2 }
 0x5c5   :  { %v1339_v40 = vpop.f32.mrf.mxu3  ;;  %v1321_v30 = vadd.f32 %v1320_v50, %v1302_v43 }
 0x5c6   :  { %v1285_v46 = vpop.f32.mrf.mxu0 }
 0x5c7   :  { %v1305_v31 = vadd.f32 %v1304_v62, %v1285_v46  ;;  %v1385_v35 = vadd.f32 %v1321_v30, %v1319_v21 }
 0x5c8   :  { %v1306_v26 = vpop.f32.mrf.mxu1 }
 0x5cc   :  { %v1323_v57 = vpop.f32.mrf.mxu2 }
 0x5cd   :  { %v1324_v44 = vadd.f32 %v1323_v57, %v1305_v31  ;;  %v1342_v36 = vpop.f32.mrf.mxu3 }
 0x5ce   :  { %v1287_v13 = vpop.f32.mrf.mxu0 }
 0x5cf   :  { %v1307_v34 = vadd.f32 %v1306_v26, %v1287_v13  ;;  %v1386_v60 = vadd.f32 %v1385_v35, %v1324_v44 }
 0x5d0   :  { %v1375_v28 = vpop.f32.mrf.mxu1 }
 0x5d4   :  { %v1325_v32 = vpop.f32.mrf.mxu2 }
 0x5d5   :  { %v1326_v25 = vadd.f32 %v1325_v32, %v1307_v34  ;;  %v1344_v51 = vpop.f32.mrf.mxu3 }
 0x5d6   :  { %v1356_v58 = vpop.f32.mrf.mxu0 }
 0x5d7   :  { %v1387_v48 = vadd.f32 %v1386_v60, %v1326_v25  ;;  %v1357_v53 = vadd.f32 %v1356_v58, %v1337_v27 }
 0x5d8   :  { %v1377_v33 = vpop.f32.mrf.mxu1 }
 0x5d9   :  { %v1388_v7 = vrot.slane %v1387_v48, 4  ;;  %v1376_v54 = vadd.f32 %v1375_v28, %v1357_v53 }
 0x5db   :  { %v1389_v47 = vadd.f32 %v1388_v7, %v1387_v48 }
 0x5dd   :  { %v1390_v52 = vrot.slane %v1389_v47, 2 }
 0x5de   :  { %v1358_v11 = vpop.f32.mrf.mxu0 }
 0x5df   :  { %v1359_v23 = vadd.f32 %v1358_v11, %v1339_v40  ;;  %v1391_v6 = vadd.f32 %v1390_v52, %v1389_v47 }
 0x5e0   :  { %v1380_v42 = vpop.f32.mrf.mxu1 }
 0x5e1   :  { %v1378_v15 = vadd.f32 %v1377_v33, %v1359_v23  ;;  %v1392_v20 = vrot.slane %v1391_v6, 1 }
 0x5e3   :  { %v1394_v63 = vadd.f32 %v1378_v15, %v1376_v54  ;;  %v1393_v8 = vadd.f32 %v1392_v20, %v1391_v6 }
 0x5e6   :  { %v1361_v45 = vpop.f32.mrf.mxu0 }
 0x5e7   :  { %v1362_v55 = vadd.f32 %v1361_v45, %v1342_v36 }
 0x5e8   :  { %v1382_v41 = vpop.f32.mrf.mxu1 }
 0x5e9   :  { %v1381_v0 = vadd.f32 %v1380_v42, %v1362_v55 }
 0x5eb   :  { %v1395_v39 = vadd.f32 %v1394_v63, %v1381_v0 }
 0x5ee   :  { %v1363_v49 = vpop.f32.mrf.mxu0 }
 0x5ef   :  { %v1364_v16 = vadd.f32 %v1363_v49, %v1344_v51  ;;  %v3409_v49 = vld [vmem:[%s3450_s6] sm:$0x3f] }
 0x5f1   :  { %v1383_v3 = vadd.f32 %v1382_v41, %v1364_v16 }
 0x5f3   :  { %v1396_v5 = vadd.f32 %v1395_v39, %v1383_v3  ;;  %v1497_v39 = vperm.slane %v3409_v49, 1 }
 0x5f5   :  { %v1397_v59 = vrot.slane %v1396_v5, 4 }
 0x5f7   :  { %v1398_v9 = vadd.f32 %v1397_v59, %v1396_v5 }
 0x5f9   :  { %v1399_v10 = vrot.slane %v1398_v9, 2 }
 0x5fb   :  { %v1400_v22 = vadd.f32 %v1399_v10, %v1398_v9 }
 0x5fd   :  { %v1401_v17 = vrot.slane %v1400_v22, 1 }
 0x5ff   :  { %v1402_v37 = vadd.f32 %v1401_v17, %v1400_v22 }
 0x601   :  { %v1403_v19 = vsel %vm599_vm2, %v1393_v8, %v1402_v37 }
 0x602   :  { %1420 = vmatmul.f32.vlgmr.msra.gmra.mxu2 %v1403_v19 }
 0x685   :  { %v1421_v61 = vpop.f32.mrf.mxu2 }
 0x686   :  { %v1424_v18 = vperm.slane %v1421_v61, 0  ;;  %v1429_v14 = vperm.slane %v1421_v61, 1 }
 0x688   :  { %v1425_v2 = vsub.f32 %v1319_v21, %v1424_v18  ;;  %v1426_v38 = vsub.f32 %v1321_v30, %v1424_v18  ;;  %v1427_v4 = vsub.f32 %v1324_v44, %v1424_v18  ;;  %v3389_v56 = vsub.f32 %v1376_v54, %v1429_v14 }
 0x689   :  { %v3391_v12 = vsub.f32 %v1378_v15, %v1429_v14  ;;  %v3393_v1 = vsub.f32 %v1381_v0, %v1429_v14  ;;  %v1428_v62 = vsub.f32 %v1326_v25, %v1424_v18  ;;  %v3395_v26 = vsub.f32 %v1383_v3, %v1429_v14 }
 0x68a   :  { %v1434_v24 = vmul.f32 %v1425_v2, %v1425_v2  ;;  %v1435_v46 = vmul.f32 %v1426_v38, %v1426_v38  ;;  %v1447_v50 = vmul.f32 %v3389_v56, %v3389_v56  ;;  %v1436_v27 = vmul.f32 %v1427_v4, %v1427_v4 }
 0x68b   :  { %v1448_v13 = vmul.f32 %v3391_v12, %v3391_v12  ;;  %v1449_v57 = vmul.f32 %v3393_v1, %v3393_v1  ;;  %v1437_v40 = vmul.f32 %v1428_v62, %v1428_v62  ;;  %v1450_v43 = vmul.f32 %v3395_v26, %v3395_v26 }
 0x68c   :  { %v1438_v28 = vadd.f32 %v1435_v46, %v1434_v24 }
 0x68d   :  { %v1451_v58 = vadd.f32 %v1448_v13, %v1447_v50 }
 0x68e   :  { %v1439_v33 = vadd.f32 %v1438_v28, %v1436_v27 }
 0x68f   :  { %v1452_v11 = vadd.f32 %v1451_v58, %v1449_v57 }
 0x690   :  { %v1440_v29 = vadd.f32 %v1439_v33, %v1437_v40 }
 0x691   :  { %v1453_v30 = vadd.f32 %v1452_v11, %v1450_v43 }
 0x692   :  { %v1441_v31 = vrot.slane %v1440_v29, 4 }
 0x693   :  { %v1454_v32 = vrot.slane %v1453_v30, 4 }
 0x694   :  { %v1442_v21 = vadd.f32 %v1441_v31, %v1440_v29 }
 0x695   :  { %v1455_v44 = vadd.f32 %v1454_v32, %v1453_v30 }
 0x696   :  { %v1443_v34 = vrot.slane %v1442_v21, 2 }
 0x697   :  { %v1456_v35 = vrot.slane %v1455_v44, 2 }
 0x698   :  { %v1444_v25 = vadd.f32 %v1443_v34, %v1442_v21 }
 0x699   :  { %v1457_v36 = vadd.f32 %v1456_v35, %v1455_v44 }
 0x69a   :  { %v1445_v60 = vrot.slane %v1444_v25, 1 }
 0x69b   :  { %v1458_v42 = vrot.slane %v1457_v36, 1 }
 0x69c   :  { %v1446_v45 = vadd.f32 %v1445_v60, %v1444_v25 }
 0x69d   :  { %v1459_v48 = vadd.f32 %v1458_v42, %v1457_v36 }
 0x69f   :  { %v1460_v23 = vsel %vm599_vm2, %v1446_v45, %v1459_v48 }
 0x6a0   :  { %1477 = vmatmul.f32.vlgmr.msra.gmra.mxu3 %v1460_v23 }
 0x723   :  { %v1478_v53 = vpop.f32.mrf.mxu3 }
 0x724   :  { %v1479_v55 = vadd.f32 1e-05, %v1478_v53 }
 0x726   :  { %2228 = vrsqrt.f32 %v1479_v55  ;;  %vm1487_vm13 = vweird.f32 %v1479_v55 }
 0x72c   :  { %v2229_v7 = vpop.eup %2228 }
 0x72d   :  { %v1482_v15 = vmul.f32 %v2229_v7, %v1479_v55  ;;  %vm1488_vm12 = vweird.f32 %v2229_v7 }
 0x72e   :  { %vm1489_vm14 = vmor %vm1487_vm13, %vm1488_vm12 }
 0x72f   :  { %v1483_v54 = vmul.f32 %v2229_v7, %v1482_v15 }
 0x731   :  { %v1484_v0 = vmul.f32 0.5, %v1483_v54 }
 0x733   :  { %v1485_v51 = vsub.f32 1.5, %v1484_v0 }
 0x735   :  { %v1486_v47 = vmul.f32 %v2229_v7, %v1485_v51 }
 0x737   :  { %v1490_v63 = vsel %vm1489_vm14, %v2229_v7, %v1486_v47  ;;  %v3416_v47 = vperm.slane %v3409_v49, 3 }
 0x738   :  { %v1491_v16 = vmul.f32 %v1490_v63, %v3409_v49  ;;  %v1503_v48 = vrot.slane %v1490_v63, 5 }
 0x73a   :  { %v1492_v41 = vperm.slane %v1491_v16, 0  ;;  %v1505_v55 = vmul.f32 %v1503_v48, %v3409_v49 }
 0x73c   :  { %v1493_v3 = vmul.f32 %v1492_v41, %v1425_v2  ;;  %v1494_v52 = vmul.f32 %v1492_v41, %v1426_v38  ;;  %v1495_v5 = vmul.f32 %v1492_v41, %v1427_v4  ;;  %v1496_v59 = vmul.f32 %v1492_v41, %v1428_v62 }
 0x73d   :  { %v1506_v0 = vperm.slane %v1505_v55, 4 }
 0x73e   :  { %v1498_v6 = vadd.f32 %v1497_v39, %v1493_v3  ;;  %v1499_v9 = vadd.f32 %v1497_v39, %v1494_v52  ;;  %v1500_v10 = vadd.f32 %v1497_v39, %v1495_v5  ;;  %v1501_v20 = vadd.f32 %v1497_v39, %v1496_v59 }
 0x73f   :  { %v1507_v41 = vmul.f32 %v1506_v0, %v3389_v56  ;;  %v1508_v63 = vmul.f32 %v1506_v0, %v3391_v12  ;;  %v1511_v39 = vperm.slane %v3409_v49, 5  ;;  %v1510_v56 = vmul.f32 %v1506_v0, %v3395_v26 }
 0x740   :  { %v1516_v22 = vmax.f32 %v1498_v6, 0.0  ;;  %v1517_v17 = vmax.f32 %v1499_v9, 0.0  ;;  %v1518_v8 = vmax.f32 %v1500_v10, 0.0  ;;  %v1519_v19 = vmax.f32 %v1501_v20, 0.0 }
 0x741   :  { %v1509_v6 = vmul.f32 %v1506_v0, %v3393_v1  ;;  %v1515_v1 = vadd.f32 %v1511_v39, %v1510_v56 }
 0x742   :  { %v1520_v37 = vadd.f32 %v1517_v17, %v1516_v22 }
 0x744   :  { %v1521_v61 = vadd.f32 %v1520_v37, %v1518_v8  ;;  %v1513_v37 = vadd.f32 %v1511_v39, %v1508_v63 }
 0x746   :  { %v1522_v18 = vadd.f32 %v1521_v61, %v1519_v19  ;;  %v1514_v61 = vadd.f32 %v1511_v39, %v1509_v6 }
 0x748   :  { %v1523_v14 = vrot.slane %v1522_v18, 4 }
 0x74a   :  { %v1524_v24 = vadd.f32 %v1523_v14, %v1522_v18 }
 0x74c   :  { %v1525_v46 = vrot.slane %v1524_v24, 2 }
 0x74e   :  { %v1526_v50 = vadd.f32 %v1525_v46, %v1524_v24 }
 0x750   :  { %v1527_v13 = vrot.slane %v1526_v50, 1 }
 0x752   :  { %v1528_v2 = vadd.f32 %v1527_v13, %v1526_v50 }
 0x754   :  { %1545 = vmatmul.f32.vlgmr.msrb.gmra.mxu0 %v1528_v2 }
 0x7d1   :  { %v1546_v38 = vpop.f32.mrf.mxu0 }
 0x7d2   :  { %v1549_v4 = vperm.slane %v1546_v38, 0 }
 0x7d4   :  { %v1550_v62 = vsub.f32 %v1516_v22, %v1549_v4  ;;  %v1551_v27 = vsub.f32 %v1517_v17, %v1549_v4  ;;  %v1552_v28 = vsub.f32 %v1518_v8, %v1549_v4  ;;  %v1553_v57 = vsub.f32 %v1519_v19, %v1549_v4 }
 0x7d5   :  { %v1512_v17 = vadd.f32 %v1511_v39, %v1507_v41 }
 0x7d6   :  { %v1554_v58 = vmul.f32 %v1550_v62, %v1550_v62  ;;  %v1555_v40 = vmul.f32 %v1551_v27, %v1551_v27  ;;  %v1556_v33 = vmul.f32 %v1552_v28, %v1552_v28  ;;  %v1557_v11 = vmul.f32 %v1553_v57, %v1553_v57 }
 0x7d8   :  { %v1558_v43 = vadd.f32 %v1555_v40, %v1554_v58 }
 0x7da   :  { %v1559_v29 = vadd.f32 %v1558_v43, %v1556_v33 }
 0x7dc   :  { %v1560_v30 = vadd.f32 %v1559_v29, %v1557_v11 }
 0x7de   :  { %v1561_v31 = vrot.slane %v1560_v30, 4 }
 0x7e0   :  { %v1562_v32 = vadd.f32 %v1561_v31, %v1560_v30 }
 0x7e2   :  { %v1563_v21 = vrot.slane %v1562_v32, 2 }
 0x7e4   :  { %v1564_v44 = vadd.f32 %v1563_v21, %v1562_v32 }
 0x7e6   :  { %v1565_v34 = vrot.slane %v1564_v44, 1 }
 0x7e8   :  { %v1566_v35 = vadd.f32 %v1565_v34, %v1564_v44 }
 0x7ea   :  { %1583 = vmatmul.f32.vlgmr.msrb.gmra.mxu1 %v1566_v35 }
 0x867   :  { %v1584_v25 = vpop.f32.mrf.mxu1 }
 0x868   :  { %v1585_v36 = vadd.f32 1e-05, %v1584_v25 }
 0x86a   :  { %2230 = vrsqrt.f32 %v1585_v36  ;;  %vm1593_vm0 = vweird.f32 %v1585_v36 }
 0x870   :  { %v2231_v60 = vpop.eup %2230 }
 0x871   :  { %v1588_v42 = vmul.f32 %v2231_v60, %v1585_v36  ;;  %vm1594_vm15 = vweird.f32 %v2231_v60 }
 0x872   :  { %vm1595_vm1 = vmor %vm1593_vm0, %vm1594_vm15 }
 0x873   :  { %v1589_v45 = vmul.f32 %v2231_v60, %v1588_v42 }
 0x875   :  { %v1590_v23 = vmul.f32 0.5, %v1589_v45 }
 0x877   :  { %v1591_v53 = vsub.f32 1.5, %v1590_v23 }
 0x879   :  { %v1592_v7 = vmul.f32 %v2231_v60, %v1591_v53 }
 0x87b   :  { %v1596_v15 = vsel %vm1595_vm1, %v2231_v60, %v1592_v7 }
 0x87c   :  { %v1598_v54 = vrot.slane %v1596_v15, 6 }
 0x87e   :  { %v1600_v51 = vmul.f32 %v1598_v54, %v3409_v49 }
 0x880   :  { %v1601_v16 = vperm.slane %v1600_v51, 2 }
 0x882   :  { %v1602_v3 = vmul.f32 %v1601_v16, %v1550_v62  ;;  %v1603_v52 = vmul.f32 %v1601_v16, %v1551_v27  ;;  %v1604_v5 = vmul.f32 %v1601_v16, %v1552_v28  ;;  %v1605_v59 = vmul.f32 %v1601_v16, %v1553_v57 }
 0x884   :  { %v1607_v9 = vadd.f32 %v3416_v47, %v1602_v3  ;;  %v1608_v10 = vadd.f32 %v3416_v47, %v1603_v52  ;;  %v1609_v20 = vadd.f32 %v3416_v47, %v1604_v5  ;;  %v1610_v22 = vadd.f32 %v3416_v47, %v1605_v59 }
 0x886   :  { %v1611_v12 = vmax.f32 %v1607_v9, 0.0  ;;  %v1612_v8 = vmax.f32 %v1608_v10, 0.0  ;;  %v1613_v19 = vmax.f32 %v1609_v20, 0.0  ;;  %v1614_v18 = vmax.f32 %v1610_v22, 0.0 }
 0x888   :  { %v1615_v14 = vadd.f32 %v1611_v12, %v1512_v17  ;;  %v1616_v24 = vadd.f32 %v1612_v8, %v1513_v37  ;;  %v1617_v46 = vadd.f32 %v1613_v19, %v1514_v61  ;;  %v1618_v13 = vadd.f32 %v1614_v18, %v1515_v1 }
 0x88a   :  { %v1619_v50 = vadd.f32 %v1616_v24, %v1615_v14 }
 0x88c   :  { %v1620_v2 = vadd.f32 %v1619_v50, %v1617_v46 }
 0x88e   :  { %v1621_v38 = vadd.f32 %v1620_v2, %v1618_v13 }
 0x890   :  { %v1622_v4 = vrot.slane %v1621_v38, 4 }
 0x892   :  { %v1623_v62 = vadd.f32 %v1622_v4, %v1621_v38 }
 0x894   :  { %v1624_v27 = vrot.slane %v1623_v62, 2 }
 0x896   :  { %v1625_v28 = vadd.f32 %v1624_v27, %v1623_v62 }
 0x898   :  { %v1626_v26 = vrot.slane %v1625_v28, 1 }
 0x89a   :  { %v1627_v57 = vadd.f32 %v1626_v26, %v1625_v28 }
 0x89c   :  { %1644 = vmatmul.f32.vlgmr.msrb.gmra.mxu2 %v1627_v57 }
 0x91f   :  { %v1645_v58 = vpop.f32.mrf.mxu2 }
 0x920   :  { %v1648_v40 = vperm.slane %v1645_v58, 0 }
 0x922   :  { %v1649_v33 = vsub.f32 %v1615_v14, %v1648_v40  ;;  %v1650_v43 = vsub.f32 %v1616_v24, %v1648_v40  ;;  %v1651_v11 = vsub.f32 %v1617_v46, %v1648_v40  ;;  %v1652_v29 = vsub.f32 %v1618_v13, %v1648_v40 }
 0x924   :  { %v1653_v30 = vmul.f32 %v1649_v33, %v1649_v33  ;;  %v1654_v31 = vmul.f32 %v1650_v43, %v1650_v43  ;;  %v1655_v32 = vmul.f32 %v1651_v11, %v1651_v11  ;;  %v1656_v44 = vmul.f32 %v1652_v29, %v1652_v29 }
 0x926   :  { %v1657_v21 = vadd.f32 %v1654_v31, %v1653_v30 }
 0x928   :  { %v1658_v34 = vadd.f32 %v1657_v21, %v1655_v32 }
 0x92a   :  { %v1659_v35 = vadd.f32 %v1658_v34, %v1656_v44 }
 0x92c   :  { %v1660_v25 = vrot.slane %v1659_v35, 4 }
 0x92e   :  { %v1661_v36 = vadd.f32 %v1660_v25, %v1659_v35 }
 0x930   :  { %v1662_v60 = vrot.slane %v1661_v36, 2 }
 0x932   :  { %v1663_v42 = vadd.f32 %v1662_v60, %v1661_v36 }
 0x934   :  { %v1664_v45 = vrot.slane %v1663_v42, 1 }
 0x936   :  { %v1665_v48 = vadd.f32 %v1664_v45, %v1663_v42 }
 0x938   :  { %1682 = vmatmul.f32.vlgmr.msrb.gmra.mxu3 %v1665_v48 }
 0x9bb   :  { %v1683_v23 = vpop.f32.mrf.mxu3 }
 0x9bc   :  { %v1684_v53 = vadd.f32 1e-05, %v1683_v23 }
 0x9be   :  { %2232 = vrsqrt.f32 %v1684_v53  ;;  %vm1692_vm3 = vweird.f32 %v1684_v53 }
 0x9c4   :  { %v2233_v55 = vpop.eup %2232 }
 0x9c5   :  { %v1687_v7 = vmul.f32 %v2233_v55, %v1684_v53  ;;  %vm1693_vm2 = vweird.f32 %v2233_v55 }
 0x9c6   :  { %vm1694_vm4 = vmor %vm1692_vm3, %vm1693_vm2 }
 0x9c7   :  { %v1688_v15 = vmul.f32 %v2233_v55, %v1687_v7 }
 0x9c9   :  { %v1689_v54 = vmul.f32 0.5, %v1688_v15 }
 0x9cb   :  { %v1690_v0 = vsub.f32 1.5, %v1689_v54 }
 0x9cd   :  { %v1691_v51 = vmul.f32 %v2233_v55, %v1690_v0 }
 0x9cf   :  { %v1695_v16 = vsel %vm1694_vm4, %v2233_v55, %v1691_v51 }
 0x9d0   :  { %v1697_v41 = vrot.slane %v1695_v16, 6 }
 0x9d2   :  { %v1699_v63 = vmul.f32 %v1697_v41, %v3409_v49 }
 0x9d4   :  { %v1700_v39 = vperm.slane %v1699_v63, 2 }
 0x9d6   :  { %v1701_v3 = vmul.f32 %v1700_v39, %v1649_v33  ;;  %v1702_v52 = vmul.f32 %v1700_v39, %v1650_v43  ;;  %v1703_v5 = vmul.f32 %v1700_v39, %v1651_v11  ;;  %v1704_v59 = vmul.f32 %v1700_v39, %v1652_v29 }
 0x9d8   :  { %v1705_v6 = vadd.f32 %v1701_v3, %v3416_v47  ;;  %v1706_v9 = vadd.f32 %v1702_v52, %v3416_v47  ;;  %v1707_v10 = vadd.f32 %v1703_v5, %v3416_v47  ;;  %v1708_v20 = vadd.f32 %v1704_v59, %v3416_v47 }
 0x9da   :  { %v1709_v22 = vmax.f32 %v1705_v6, 0.0  ;;  %v1710_v56 = vmax.f32 %v1706_v9, 0.0  ;;  %v1711_v17 = vmax.f32 %v1707_v10, 0.0  ;;  %v1712_v12 = vmax.f32 %v1708_v20, 0.0 }
 0x9dc   :  { %1713 = vst [vmem:[%s3451_s7] sm:$0xff] %v1709_v22 }
 0x9dd   :  { %1714 = vst [vmem:[%s3451_s7 + $0x8] sm:$0xff] %v1710_v56 }
 0x9de   :  { %1715 = vst [vmem:[%s3451_s7 + $0x10] sm:$0xff] %v1711_v17 }
 0x9df   :  { %1716 = vst [vmem:[%s3451_s7 + $0x18] sm:$0xff] %v1712_v12 }
 0x9e0   :  { %1721 = vsyncpa [#allocation3], 1 }

</bundles_post_ra>
